<compile_context>
chip_gen: v6e
topology: v6e:2x2x1
jax: 0.10.0
libtpu: 0.0.40
codegen_flags: <defaults>
</compile_context>

<pallas_src>
import functools

import jax
import jax.numpy as jnp
from jax.experimental import pallas as pl
from jax.experimental.pallas import tpu as pltpu

EPS_BN = 1e-5      # PyTorch BatchNorm1d default eps
EPS_NORM = 1e-12   # F.normalize default eps

# Rows of the packed (N_VEC_ROWS, D_max) parameter-vector array.
ROW_MO_B = 0                      # momentum encoder bias
ROW_MP_G1, ROW_MP_BE1 = 1, 2      # momentum projector BN1 gamma / beta
ROW_MP_G2, ROW_MP_BE2 = 3, 4      # momentum projector BN2 gamma / beta
ROW_MP_B3 = 5                     # momentum projector linear3 bias
ROW_ON_B = 6                      # online encoder bias
ROW_OP_G1, ROW_OP_BE1 = 7, 8
ROW_OP_G2, ROW_OP_BE2 = 9, 10
ROW_OP_B3 = 11
ROW_PR_G1, ROW_PR_BE1 = 12, 13    # predictor BN gamma / beta
ROW_PR_B2 = 14                    # predictor linear2 bias
N_VEC_ROWS = 16                   # padded to a sublane multiple


def _round_up(x, m):
    return ((x + m - 1) // m) * m


# ---------------------------------------------------------------------------
# Kernel 1: global average pool, tiled over (batch, channel, spatial) grid
# ---------------------------------------------------------------------------
def pool_kernel(x_ref, pooled_ref, *, inv_hw, hw, thw, need_mask):
    si = pl.program_id(2)

    @pl.when(si == 0)
    def _():
        pooled_ref[...] = jnp.zeros_like(pooled_ref)

    x = x_ref[...].astype(jnp.float32)          # cast in-kernel, no host copy
    if need_mask:
        pos = si * thw + jax.lax.broadcasted_iota(jnp.int32, x.shape, 2)
        x = jnp.where(pos < hw, x, 0.0)
    pooled_ref[...] += jnp.sum(x, axis=-1)

    @pl.when(si == pl.num_programs(2) - 1)
    def _():
        pooled_ref[...] *= inv_hw


def run_pool(x_nchw, *, vmem_budget_bytes=8 * 1024 * 1024):
    """Global average pool (B, C, H, W) -> (B, C) with a tiled reduction."""
    n, c, h, w = x_nchw.shape
    hw = h * w
    itemsize = jnp.dtype(x_nchw.dtype).itemsize
    xf = x_nchw.reshape(n, c, hw)               # free reshape, native dtype

    # Batch tile: 8 rows (or full n).  With realistic batches this gives >= 2
    # "parallel" batch-grid steps so both v7x TensorCores get work.
    tb = 8 if n % 8 == 0 else n

    # Channel tile: only tile when C is a large multiple of 128.
    if c % 128 == 0 and c > 512:
        tc = 512
        while c % tc != 0:
            tc //= 2                            # stays a multiple of 128
    else:
        tc = c

    # Spatial tile sized from a per-block VMEM budget (inputs are
    # double-buffered by the pipeline, hence the factor 2).
    max_thw = max(128,
                  (vmem_budget_bytes // (2 * tb * tc * itemsize)) // 128 * 128)
    thw = min(max_thw, _round_up(hw, 128))
    grid = (n // tb, c // tc, pl.cdiv(hw, thw))
    need_mask = grid[2] * thw != hw

    kernel = functools.partial(pool_kernel, inv_hw=1.0 / float(hw), hw=hw,
                               thw=thw, need_mask=need_mask)
    return pl.pallas_call(
        kernel,
        grid=grid,
        in_specs=[pl.BlockSpec((tb, tc, thw), lambda bi, ci, si: (bi, ci, si))],
        out_specs=pl.BlockSpec((tb, tc), lambda bi, ci, si: (bi, ci)),
        out_shape=jax.ShapeDtypeStruct((n, c), jnp.float32),
        compiler_params=pltpu.CompilerParams(
            dimension_semantics=("parallel", "parallel", "arbitrary"),
            vmem_limit_bytes=48 * 1024 * 1024,
        ),
    )(xf)


# ---------------------------------------------------------------------------
# Kernel 2: fused encoders + projectors + predictor + BYOL loss
# ---------------------------------------------------------------------------
def fused_kernel(pooled_ref, enc_w_ref,
                 mp_w1, mp_w2, mp_w3,
                 op_w1, op_w2, op_w3,
                 pr_w1, pr_w2,
                 vecs_ref,
                 loss_ref, z_onl_ref, e_onl_ref,
                 *, b, d_backbone, d_proj, d_pred):
    pooled = pooled_ref[...]                                   # (2B, C) f32

    def vec(row, d):                                           # (1, d) f32
        return vecs_ref[row:row + 1, :d]

    def dense(x, w_ref, bias=None):
        # bf16 MXU inputs, f32 accumulation; BN / loss math stays in f32.
        y = jnp.dot(x.astype(jnp.bfloat16), w_ref[...],
                    preferred_element_type=jnp.float32)
        if bias is not None:
            y = y + bias
        return y

    def bn_per_view(h, gamma=None, beta=None):
        # Per-view batch statistics (reference runs each view separately).
        # (2B, D) -> (2, B, D) reshape is tile-aligned: no slices / concat.
        d = h.shape[-1]
        h3 = h.reshape(2, b, d)
        mean = jnp.mean(h3, axis=1, keepdims=True)
        var = jnp.mean((h3 - mean) ** 2, axis=1, keepdims=True)
        y = ((h3 - mean) * jax.lax.rsqrt(var + EPS_BN)).reshape(2 * b, d)
        if gamma is not None:
            y = y * gamma + beta
        return y

    def l2_normalize(x):
        # matches F.normalize: x / max(||x||, eps)
        ss = jnp.sum(x * x, axis=-1, keepdims=True)
        return x * jax.lax.rsqrt(jnp.maximum(ss, EPS_NORM * EPS_NORM))

    def projector(e, w1, g1, be1, w2, g2, be2, w3, b3):
        # Linear(no bias)->BN->ReLU->Linear(no bias)->BN->ReLU
        #   ->Linear(bias)->BN(no affine)
        h = jnp.maximum(bn_per_view(dense(e, w1), vec(g1, d_backbone),
                                    vec(be1, d_backbone)), 0.0)
        h = jnp.maximum(bn_per_view(dense(h, w2), vec(g2, d_backbone),
                                    vec(be2, d_backbone)), 0.0)
        return bn_per_view(dense(h, w3, vec(b3, d_proj)))

    # Shared-LHS encoder matmul: momentum | online weights packed along N.
    e_both = dense(pooled, enc_w_ref)                          # (2B, 2*Db)
    e_mom = e_both[:, :d_backbone] + vec(ROW_MO_B, d_backbone)
    e_onl = e_both[:, d_backbone:] + vec(ROW_ON_B, d_backbone)
    e_onl_ref[...] = e_onl

    # Momentum (target) branch -- forward values only (torch.no_grad()).
    z_mom = projector(e_mom, mp_w1, ROW_MP_G1, ROW_MP_BE1,
                      mp_w2, ROW_MP_G2, ROW_MP_BE2, mp_w3, ROW_MP_B3)

    # Online branch.
    z_onl = projector(e_onl, op_w1, ROW_OP_G1, ROW_OP_BE1,
                      op_w2, ROW_OP_G2, ROW_OP_BE2, op_w3, ROW_OP_B3)
    z_onl_ref[...] = z_onl

    # Predictor: Linear(no bias) -> BN -> ReLU -> Linear(bias).
    h = jnp.maximum(bn_per_view(dense(z_onl, pr_w1), vec(ROW_PR_G1, d_pred),
                                vec(ROW_PR_BE1, d_pred)), 0.0)
    p = dense(h, pr_w2, vec(ROW_PR_B2, d_proj))

    # Symmetric loss: criterion(p1, z2m) + criterion(p2, z1m), then mean.
    # View "swap" via static half-slices of the (2, B, D) reshape.
    pn3 = l2_normalize(p).reshape(2, b, d_proj)
    zn3 = l2_normalize(z_mom).reshape(2, b, d_proj)
    cross = (jnp.sum(pn3[0] * zn3[1], axis=-1, keepdims=True)
             + jnp.sum(pn3[1] * zn3[0], axis=-1, keepdims=True))  # (B, 1)
    per = 4.0 - 2.0 * cross                                       # (B, 1)
    loss_ref[...] = jnp.sum(per, axis=0, keepdims=True) / float(b)


def run_fused(pooled, params, b, d_backbone, d_proj, d_pred):
    two_b = 2 * b
    kernel = functools.partial(fused_kernel, b=b, d_backbone=d_backbone,
                               d_proj=d_proj, d_pred=d_pred)
    return pl.pallas_call(
        kernel,
        out_shape=(
            jax.ShapeDtypeStruct((1, 1), jnp.float32),            # loss
            jax.ShapeDtypeStruct((two_b, d_proj), jnp.float32),   # z_onl
            jax.ShapeDtypeStruct((two_b, d_backbone), jnp.float32),  # e_onl
        ),
        compiler_params=pltpu.CompilerParams(
            vmem_limit_bytes=48 * 1024 * 1024),
    )(pooled,
      params["enc_w_both"],
      params["mp_w1"], params["mp_w2"], params["mp_w3"],
      params["op_w1"], params["op_w2"], params["op_w3"],
      params["pr_w1"], params["pr_w2"],
      params["vecs"])


# ---------------------------------------------------------------------------
# BYOL forward (matches the PyTorch module's forward semantics)
# ---------------------------------------------------------------------------
@jax.jit
def byol_forward(x1, x2, params):
    b = x1.shape[0]
    d_backbone = params["mp_w1"].shape[0]
    d_proj = params["mp_w3"].shape[1]
    d_pred = params["pr_w1"].shape[1]

    # One pooling pass per view (avoids materializing a (2B,C,H,W) concat in
    # HBM); the pooled features are tiny, so concatenating them is free.
    pooled = jnp.concatenate([run_pool(x1), run_pool(x2)], axis=0)  # (2B, C)

    loss, z_onl, e_onl = run_fused(pooled, params, b,
                                   d_backbone, d_proj, d_pred)
    return (loss[0, 0],
            [z_onl[:b], z_onl[b:]],
            [e_onl[:b], e_onl[b:]])


# ---------------------------------------------------------------------------
# Deterministic parameter construction
# ---------------------------------------------------------------------------
def init_params(key, c_in, d_backbone, d_proj, d_pred):
    ks = jax.random.split(key, 8)

    def lin(k, fan_in, fan_out):
        return (jax.random.normal(k, (fan_in, fan_out), jnp.float32)
                / jnp.sqrt(float(fan_in)))

    enc_w = lin(ks[0], c_in, d_backbone)
    p_w1 = lin(ks[1], d_backbone, d_backbone)
    p_w2 = lin(ks[2], d_backbone, d_backbone)
    p_w3 = lin(ks[3], d_backbone, d_proj)
    pr_w1 = lin(ks[4], d_proj, d_pred)
    pr_w2 = lin(ks[5], d_pred, d_proj)

    # Packed gamma/beta/bias vectors (f32): zeros except gammas = 1.
    d_max = max(d_backbone, d_proj, d_pred)
    vecs = jnp.zeros((N_VEC_ROWS, d_max), jnp.float32)
    for row, d in ((ROW_MP_G1, d_backbone), (ROW_MP_G2, d_backbone),
                   (ROW_OP_G1, d_backbone), (ROW_OP_G2, d_backbone),
                   (ROW_PR_G1, d_pred)):
        vecs = vecs.at[row, :d].set(1.0)

    bf16 = lambda a: a.astype(jnp.bfloat16)
    # momentum = deepcopy(online) at init -> identical parameter values
    return {
        "enc_w_both": bf16(jnp.concatenate([enc_w, enc_w], axis=1)),
        "mp_w1": bf16(p_w1), "mp_w2": bf16(p_w2), "mp_w3": bf16(p_w3),
        "op_w1": bf16(p_w1), "op_w2": bf16(p_w2), "op_w3": bf16(p_w3),
        "pr_w1": bf16(pr_w1), "pr_w2": bf16(pr_w2),
        "vecs": vecs,
    }


if __name__ == "__main__":
    # Small synthetic shapes: batch multiple of 8, feature dims lane-dense
    # multiples of 128 (scaled-down stand-ins for 2048 / 2048 / 512).
    B, C, H, W = 8, 4, 16, 16
    D_BACKBONE, D_PROJ, D_PRED = 128, 128, 128

    key = jax.random.PRNGKey(0)
    kx1, kx2, kp = jax.random.split(key, 3)
    x1 = jax.random.normal(kx1, (B, C, H, W), jnp.float32)   # NCHW, view 1
    x2 = jax.random.normal(kx2, (B, C, H, W), jnp.float32)   # NCHW, view 2

    params = init_params(kp, C, D_BACKBONE, D_PROJ, D_PRED)

    loss, (z1_onl, z2_onl), (e1_onl, e2_onl) = byol_forward(x1, x2, params)
    jax.block_until_ready((loss, z1_onl, z2_onl, e1_onl, e2_onl))

    assert z1_onl.shape == (B, D_PROJ) and z2_onl.shape == (B, D_PROJ)
    assert e1_onl.shape == (B, D_BACKBONE) and e2_onl.shape == (B, D_BACKBONE)
    assert loss.shape == ()
    assert bool(jnp.isfinite(loss))

    print("KERNEL_OK")
</pallas_src>

<mosaic_0001>
module attributes {stable_mosaic.version = 11 : i64} {
  func.func @pool_kernel(%arg0: i32, %arg1: i32, %arg2: i32, %arg3: memref<8x4x256xf32, #tpu.memory_space<vmem>>, %arg4: memref<8x4xf32, #tpu.memory_space<vmem>>) attributes {dimension_semantics = [#tpu.dimension_semantics<parallel>, #tpu.dimension_semantics<parallel>, #tpu.dimension_semantics<arbitrary>], iteration_bounds = array<i64: 1, 1, 1>, scalar_prefetch = 0 : i64, scratch_operands = 0 : i64, tpu.core_type = #tpu.core_type<tc>, window_params = [{transform_indices = @transform_0, window_bounds = array<i64: 8, 4, 256>}, {transform_indices = @transform_1, window_bounds = array<i64: 8, 4>}]} {
    %c0_i32 = arith.constant 0 : i32
    %0 = arith.cmpi eq, %arg2, %c0_i32 : i32
    %1 = arith.extui %0 : i1 to i32
    %c0_i32_0 = arith.constant 0 : i32
    %2 = arith.cmpi ne, %1, %c0_i32_0 : i32
    scf.if %2 {
      %cst_9 = arith.constant 0.000000e+00 : f32
      %11 = vector.broadcast %cst_9 : f32 to vector<8x4xf32>
      %c0_10 = arith.constant 0 : index
      %c0_11 = arith.constant 0 : index
      %12 = vector.load %arg4[%c0_10, %c0_11] : memref<8x4xf32, #tpu.memory_space<vmem>>, vector<8x4xf32>
      tpu.vector_store %arg4[%c0_10, %c0_11], %11 {strides = array<i32>} : memref<8x4xf32, #tpu.memory_space<vmem>>, vector<8x4xf32>,
    } else {
    }
    %c0 = arith.constant 0 : index
    %c0_1 = arith.constant 0 : index
    %c0_2 = arith.constant 0 : index
    %3 = vector.load %arg3[%c0, %c0_1, %c0_2] : memref<8x4x256xf32, #tpu.memory_space<vmem>>, vector<8x4x256xf32>
    %c0_3 = arith.constant 0 : index
    %c0_4 = arith.constant 0 : index
    %4 = vector.load %arg4[%c0_3, %c0_4] : memref<8x4xf32, #tpu.memory_space<vmem>>, vector<8x4xf32>
    %cst = arith.constant dense<0.000000e+00> : vector<8x4xf32>
    %5 = vector.multi_reduction <add>, %3, %cst [2] : vector<8x4x256xf32> to vector<8x4xf32>
    %6 = arith.addf %4, %5 : vector<8x4xf32>
    %c0_5 = arith.constant 0 : index
    %c0_6 = arith.constant 0 : index
    %7 = vector.load %arg4[%c0_5, %c0_6] : memref<8x4xf32, #tpu.memory_space<vmem>>, vector<8x4xf32>
    tpu.vector_store %arg4[%c0_5, %c0_6], %6 {strides = array<i32>} : memref<8x4xf32, #tpu.memory_space<vmem>>, vector<8x4xf32>,
    %c0_i32_7 = arith.constant 0 : i32
    %8 = arith.cmpi eq, %arg2, %c0_i32_7 : i32
    %9 = arith.extui %8 : i1 to i32
    %c0_i32_8 = arith.constant 0 : i32
    %10 = arith.cmpi ne, %9, %c0_i32_8 : i32
    scf.if %10 {
      %c0_9 = arith.constant 0 : index
      %c0_10 = arith.constant 0 : index
      %11 = vector.load %arg4[%c0_9, %c0_10] : memref<8x4xf32, #tpu.memory_space<vmem>>, vector<8x4xf32>
      %cst_11 = arith.constant 3.906250e-03 : f32
      %12 = vector.broadcast %cst_11 : f32 to vector<8x4xf32>
      %13 = arith.mulf %11, %12 : vector<8x4xf32>
      %c0_12 = arith.constant 0 : index
      %c0_13 = arith.constant 0 : index
      %14 = vector.load %arg4[%c0_12, %c0_13] : memref<8x4xf32, #tpu.memory_space<vmem>>, vector<8x4xf32>
      tpu.vector_store %arg4[%c0_12, %c0_13], %13 {strides = array<i32>} : memref<8x4xf32, #tpu.memory_space<vmem>>, vector<8x4xf32>,
    } else {
    }
    return
  }
  func.func @transform_0(%arg0: i32, %arg1: i32, %arg2: i32) -> (i32, i32, i32) {
    %c0_i32 = arith.constant 0 : i32
    return %arg0, %arg1, %arg2 : i32, i32, i32
  }
  func.func @transform_1(%arg0: i32, %arg1: i32, %arg2: i32) -> (i32, i32) {
    %c0_i32 = arith.constant 0 : i32
    return %arg0, %arg1 : i32, i32
  }
}

module attributes {stable_mosaic.version = 11 : i64} {
  func.func @fused_kernel(%arg0: memref<16x4xf32, #tpu.memory_space<vmem>>, %arg1: memref<4x256xbf16, #tpu.memory_space<vmem>>, %arg2: memref<128x128xbf16, #tpu.memory_space<vmem>>, %arg3: memref<128x128xbf16, #tpu.memory_space<vmem>>, %arg4: memref<128x128xbf16, #tpu.memory_space<vmem>>, %arg5: memref<128x128xbf16, #tpu.memory_space<vmem>>, %arg6: memref<128x128xbf16, #tpu.memory_space<vmem>>, %arg7: memref<128x128xbf16, #tpu.memory_space<vmem>>, %arg8: memref<128x128xbf16, #tpu.memory_space<vmem>>, %arg9: memref<128x128xbf16, #tpu.memory_space<vmem>>, %arg10: memref<16x128xf32, #tpu.memory_space<vmem>>, %arg11: memref<1x1xf32, #tpu.memory_space<vmem>>, %arg12: memref<16x128xf32, #tpu.memory_space<vmem>>, %arg13: memref<16x128xf32, #tpu.memory_space<vmem>>) attributes {dimension_semantics = [], scalar_prefetch = 0 : i64, scratch_operands = 0 : i64, tpu.core_type = #tpu.core_type<tc>} {
    %c0 = arith.constant 0 : index
    %c0_0 = arith.constant 0 : index
    %0 = vector.load %arg0[%c0, %c0_0] : memref<16x4xf32, #tpu.memory_space<vmem>>, vector<16x4xf32>
    %1 = arith.truncf %0 : vector<16x4xf32> to vector<16x4xbf16>
    %c0_1 = arith.constant 0 : index
    %c0_2 = arith.constant 0 : index
    %2 = vector.load %arg1[%c0_1, %c0_2] : memref<4x256xbf16, #tpu.memory_space<vmem>>, vector<4x256xbf16>
    %cst = arith.constant dense<0.000000e+00> : vector<16x256xf32>
    %3 = tpu.matmul %1, %2, %cst {dimension_numbers = #tpu.dot_dimension_numbers<[1], [0], [0], [1], [0, 0, 1, 1], [], []>} : vector<16x4xbf16>, vector<4x256xbf16>, vector<16x256xf32> -> vector<16x256xf32>
    %4 = vector.extract_strided_slice %3 {offsets = [0, 0], sizes = [16, 128], strides = [1, 1]} : vector<16x256xf32> to vector<16x128xf32>
    %c0_3 = arith.constant 0 : index
    %c0_4 = arith.constant 0 : index
    %5 = vector.load %arg10[%c0_3, %c0_4] : memref<16x128xf32, #tpu.memory_space<vmem>>, vector<1x128xf32>
    %6 = vector.broadcast %5 : vector<1x128xf32> to vector<16x128xf32>
    %7 = arith.addf %4, %6 : vector<16x128xf32>
    %8 = vector.extract_strided_slice %3 {offsets = [0, 128], sizes = [16, 128], strides = [1, 1]} : vector<16x256xf32> to vector<16x128xf32>
    %c6 = arith.constant 6 : index
    %c0_5 = arith.constant 0 : index
    %9 = vector.load %arg10[%c6, %c0_5] : memref<16x128xf32, #tpu.memory_space<vmem>>, vector<1x128xf32>
    %10 = vector.broadcast %9 : vector<1x128xf32> to vector<16x128xf32>
    %11 = arith.addf %8, %10 : vector<16x128xf32>
    %c0_6 = arith.constant 0 : index
    %c0_7 = arith.constant 0 : index
    %12 = vector.load %arg13[%c0_6, %c0_7] : memref<16x128xf32, #tpu.memory_space<vmem>>, vector<16x128xf32>
    tpu.vector_store %arg13[%c0_6, %c0_7], %11 {strides = array<i32>} : memref<16x128xf32, #tpu.memory_space<vmem>>, vector<16x128xf32>,
    %13 = arith.truncf %7 : vector<16x128xf32> to vector<16x128xbf16>
    %c0_8 = arith.constant 0 : index
    %c0_9 = arith.constant 0 : index
    %14 = vector.load %arg2[%c0_8, %c0_9] : memref<128x128xbf16, #tpu.memory_space<vmem>>, vector<128x128xbf16>
    %cst_10 = arith.constant dense<0.000000e+00> : vector<16x128xf32>
    %15 = tpu.matmul %13, %14, %cst_10 {dimension_numbers = #tpu.dot_dimension_numbers<[1], [0], [0], [1], [0, 0, 1, 1], [], []>} : vector<16x128xbf16>, vector<128x128xbf16>, vector<16x128xf32> -> vector<16x128xf32>
    %c1 = arith.constant 1 : index
    %c0_11 = arith.constant 0 : index
    %16 = vector.load %arg10[%c1, %c0_11] : memref<16x128xf32, #tpu.memory_space<vmem>>, vector<1x128xf32>
    %c2 = arith.constant 2 : index
    %c0_12 = arith.constant 0 : index
    %17 = vector.load %arg10[%c2, %c0_12] : memref<16x128xf32, #tpu.memory_space<vmem>>, vector<1x128xf32>
    %18 = vector.shape_cast %15 : vector<16x128xf32> to vector<2x8x128xf32>
    %cst_13 = arith.constant dense<0.000000e+00> : vector<2x128xf32>
    %19 = vector.multi_reduction <add>, %18, %cst_13 [1] : vector<2x8x128xf32> to vector<2x128xf32>
    %20 = vector.shape_cast %19 : vector<2x128xf32> to vector<2x1x128xf32>
    %cst_14 = arith.constant 8.000000e+00 : f32
    %21 = vector.broadcast %cst_14 : f32 to vector<2x1x128xf32>
    %22 = arith.divf %20, %21 : vector<2x1x128xf32>
    %23 = vector.broadcast %22 : vector<2x1x128xf32> to vector<2x8x128xf32>
    %24 = arith.subf %18, %23 : vector<2x8x128xf32>
    %25 = arith.mulf %24, %24 : vector<2x8x128xf32>
    %cst_15 = arith.constant dense<0.000000e+00> : vector<2x128xf32>
    %26 = vector.multi_reduction <add>, %25, %cst_15 [1] : vector<2x8x128xf32> to vector<2x128xf32>
    %27 = vector.shape_cast %26 : vector<2x128xf32> to vector<2x1x128xf32>
    %cst_16 = arith.constant 8.000000e+00 : f32
    %28 = vector.broadcast %cst_16 : f32 to vector<2x1x128xf32>
    %29 = arith.divf %27, %28 : vector<2x1x128xf32>
    %30 = vector.broadcast %22 : vector<2x1x128xf32> to vector<2x8x128xf32>
    %31 = arith.subf %18, %30 : vector<2x8x128xf32>
    %cst_17 = arith.constant 9.99999974E-6 : f32
    %32 = vector.broadcast %cst_17 : f32 to vector<2x1x128xf32>
    %33 = arith.addf %29, %32 : vector<2x1x128xf32>
    %34 = math.rsqrt %33 : vector<2x1x128xf32>
    %35 = vector.broadcast %34 : vector<2x1x128xf32> to vector<2x8x128xf32>
    %36 = arith.mulf %31, %35 : vector<2x8x128xf32>
    %37 = vector.shape_cast %36 : vector<2x8x128xf32> to vector<16x128xf32>
    %38 = vector.broadcast %16 : vector<1x128xf32> to vector<16x128xf32>
    %39 = arith.mulf %37, %38 : vector<16x128xf32>
    %40 = vector.broadcast %17 : vector<1x128xf32> to vector<16x128xf32>
    %41 = arith.addf %39, %40 : vector<16x128xf32>
    %cst_18 = arith.constant 0.000000e+00 : f32
    %42 = vector.broadcast %cst_18 : f32 to vector<16x128xf32>
    %43 = arith.maximumf %41, %42 : vector<16x128xf32>
    %44 = arith.truncf %43 : vector<16x128xf32> to vector<16x128xbf16>
    %c0_19 = arith.constant 0 : index
    %c0_20 = arith.constant 0 : index
    %45 = vector.load %arg3[%c0_19, %c0_20] : memref<128x128xbf16, #tpu.memory_space<vmem>>, vector<128x128xbf16>
    %cst_21 = arith.constant dense<0.000000e+00> : vector<16x128xf32>
    %46 = tpu.matmul %44, %45, %cst_21 {dimension_numbers = #tpu.dot_dimension_numbers<[1], [0], [0], [1], [0, 0, 1, 1], [], []>} : vector<16x128xbf16>, vector<128x128xbf16>, vector<16x128xf32> -> vector<16x128xf32>
    %c3 = arith.constant 3 : index
    %c0_22 = arith.constant 0 : index
    %47 = vector.load %arg10[%c3, %c0_22] : memref<16x128xf32, #tpu.memory_space<vmem>>, vector<1x128xf32>
    %c4 = arith.constant 4 : index
    %c0_23 = arith.constant 0 : index
    %48 = vector.load %arg10[%c4, %c0_23] : memref<16x128xf32, #tpu.memory_space<vmem>>, vector<1x128xf32>
    %49 = vector.shape_cast %46 : vector<16x128xf32> to vector<2x8x128xf32>
    %cst_24 = arith.constant dense<0.000000e+00> : vector<2x128xf32>
    %50 = vector.multi_reduction <add>, %49, %cst_24 [1] : vector<2x8x128xf32> to vector<2x128xf32>
    %51 = vector.shape_cast %50 : vector<2x128xf32> to vector<2x1x128xf32>
    %cst_25 = arith.constant 8.000000e+00 : f32
    %52 = vector.broadcast %cst_25 : f32 to vector<2x1x128xf32>
    %53 = arith.divf %51, %52 : vector<2x1x128xf32>
    %54 = vector.broadcast %53 : vector<2x1x128xf32> to vector<2x8x128xf32>
    %55 = arith.subf %49, %54 : vector<2x8x128xf32>
    %56 = arith.mulf %55, %55 : vector<2x8x128xf32>
    %cst_26 = arith.constant dense<0.000000e+00> : vector<2x128xf32>
    %57 = vector.multi_reduction <add>, %56, %cst_26 [1] : vector<2x8x128xf32> to vector<2x128xf32>
    %58 = vector.shape_cast %57 : vector<2x128xf32> to vector<2x1x128xf32>
    %cst_27 = arith.constant 8.000000e+00 : f32
    %59 = vector.broadcast %cst_27 : f32 to vector<2x1x128xf32>
    %60 = arith.divf %58, %59 : vector<2x1x128xf32>
    %61 = vector.broadcast %53 : vector<2x1x128xf32> to vector<2x8x128xf32>
    %62 = arith.subf %49, %61 : vector<2x8x128xf32>
    %cst_28 = arith.constant 9.99999974E-6 : f32
    %63 = vector.broadcast %cst_28 : f32 to vector<2x1x128xf32>
    %64 = arith.addf %60, %63 : vector<2x1x128xf32>
    %65 = math.rsqrt %64 : vector<2x1x128xf32>
    %66 = vector.broadcast %65 : vector<2x1x128xf32> to vector<2x8x128xf32>
    %67 = arith.mulf %62, %66 : vector<2x8x128xf32>
    %68 = vector.shape_cast %67 : vector<2x8x128xf32> to vector<16x128xf32>
    %69 = vector.broadcast %47 : vector<1x128xf32> to vector<16x128xf32>
    %70 = arith.mulf %68, %69 : vector<16x128xf32>
    %71 = vector.broadcast %48 : vector<1x128xf32> to vector<16x128xf32>
    %72 = arith.addf %70, %71 : vector<16x128xf32>
    %cst_29 = arith.constant 0.000000e+00 : f32
    %73 = vector.broadcast %cst_29 : f32 to vector<16x128xf32>
    %74 = arith.maximumf %72, %73 : vector<16x128xf32>
    %c5 = arith.constant 5 : index
    %c0_30 = arith.constant 0 : index
    %75 = vector.load %arg10[%c5, %c0_30] : memref<16x128xf32, #tpu.memory_space<vmem>>, vector<1x128xf32>
    %76 = arith.truncf %74 : vector<16x128xf32> to vector<16x128xbf16>
    %c0_31 = arith.constant 0 : index
    %c0_32 = arith.constant 0 : index
    %77 = vector.load %arg4[%c0_31, %c0_32] : memref<128x128xbf16, #tpu.memory_space<vmem>>, vector<128x128xbf16>
    %cst_33 = arith.constant dense<0.000000e+00> : vector<16x128xf32>
    %78 = tpu.matmul %76, %77, %cst_33 {dimension_numbers = #tpu.dot_dimension_numbers<[1], [0], [0], [1], [0, 0, 1, 1], [], []>} : vector<16x128xbf16>, vector<128x128xbf16>, vector<16x128xf32> -> vector<16x128xf32>
    %79 = vector.broadcast %75 : vector<1x128xf32> to vector<16x128xf32>
    %80 = arith.addf %78, %79 : vector<16x128xf32>
    %81 = vector.shape_cast %80 : vector<16x128xf32> to vector<2x8x128xf32>
    %cst_34 = arith.constant dense<0.000000e+00> : vector<2x128xf32>
    %82 = vector.multi_reduction <add>, %81, %cst_34 [1] : vector<2x8x128xf32> to vector<2x128xf32>
    %83 = vector.shape_cast %82 : vector<2x128xf32> to vector<2x1x128xf32>
    %cst_35 = arith.constant 8.000000e+00 : f32
    %84 = vector.broadcast %cst_35 : f32 to vector<2x1x128xf32>
    %85 = arith.divf %83, %84 : vector<2x1x128xf32>
    %86 = vector.broadcast %85 : vector<2x1x128xf32> to vector<2x8x128xf32>
    %87 = arith.subf %81, %86 : vector<2x8x128xf32>
    %88 = arith.mulf %87, %87 : vector<2x8x128xf32>
    %cst_36 = arith.constant dense<0.000000e+00> : vector<2x128xf32>
    %89 = vector.multi_reduction <add>, %88, %cst_36 [1] : vector<2x8x128xf32> to vector<2x128xf32>
    %90 = vector.shape_cast %89 : vector<2x128xf32> to vector<2x1x128xf32>
    %cst_37 = arith.constant 8.000000e+00 : f32
    %91 = vector.broadcast %cst_37 : f32 to vector<2x1x128xf32>
    %92 = arith.divf %90, %91 : vector<2x1x128xf32>
    %93 = vector.broadcast %85 : vector<2x1x128xf32> to vector<2x8x128xf32>
    %94 = arith.subf %81, %93 : vector<2x8x128xf32>
    %cst_38 = arith.constant 9.99999974E-6 : f32
    %95 = vector.broadcast %cst_38 : f32 to vector<2x1x128xf32>
    %96 = arith.addf %92, %95 : vector<2x1x128xf32>
    %97 = math.rsqrt %96 : vector<2x1x128xf32>
    %98 = vector.broadcast %97 : vector<2x1x128xf32> to vector<2x8x128xf32>
    %99 = arith.mulf %94, %98 : vector<2x8x128xf32>
    %100 = vector.shape_cast %99 : vector<2x8x128xf32> to vector<16x128xf32>
    %101 = arith.truncf %11 : vector<16x128xf32> to vector<16x128xbf16>
    %c0_39 = arith.constant 0 : index
    %c0_40 = arith.constant 0 : index
    %102 = vector.load %arg5[%c0_39, %c0_40] : memref<128x128xbf16, #tpu.memory_space<vmem>>, vector<128x128xbf16>
    %cst_41 = arith.constant dense<0.000000e+00> : vector<16x128xf32>
    %103 = tpu.matmul %101, %102, %cst_41 {dimension_numbers = #tpu.dot_dimension_numbers<[1], [0], [0], [1], [0, 0, 1, 1], [], []>} : vector<16x128xbf16>, vector<128x128xbf16>, vector<16x128xf32> -> vector<16x128xf32>
    %c7 = arith.constant 7 : index
    %c0_42 = arith.constant 0 : index
    %104 = vector.load %arg10[%c7, %c0_42] : memref<16x128xf32, #tpu.memory_space<vmem>>, vector<1x128xf32>
    %c8 = arith.constant 8 : index
    %c0_43 = arith.constant 0 : index
    %105 = vector.load %arg10[%c8, %c0_43] : memref<16x128xf32, #tpu.memory_space<vmem>>, vector<1x128xf32>
    %106 = vector.shape_cast %103 : vector<16x128xf32> to vector<2x8x128xf32>
    %cst_44 = arith.constant dense<0.000000e+00> : vector<2x128xf32>
    %107 = vector.multi_reduction <add>, %106, %cst_44 [1] : vector<2x8x128xf32> to vector<2x128xf32>
    %108 = vector.shape_cast %107 : vector<2x128xf32> to vector<2x1x128xf32>
    %cst_45 = arith.constant 8.000000e+00 : f32
    %109 = vector.broadcast %cst_45 : f32 to vector<2x1x128xf32>
    %110 = arith.divf %108, %109 : vector<2x1x128xf32>
    %111 = vector.broadcast %110 : vector<2x1x128xf32> to vector<2x8x128xf32>
    %112 = arith.subf %106, %111 : vector<2x8x128xf32>
    %113 = arith.mulf %112, %112 : vector<2x8x128xf32>
    %cst_46 = arith.constant dense<0.000000e+00> : vector<2x128xf32>
    %114 = vector.multi_reduction <add>, %113, %cst_46 [1] : vector<2x8x128xf32> to vector<2x128xf32>
    %115 = vector.shape_cast %114 : vector<2x128xf32> to vector<2x1x128xf32>
    %cst_47 = arith.constant 8.000000e+00 : f32
    %116 = vector.broadcast %cst_47 : f32 to vector<2x1x128xf32>
    %117 = arith.divf %115, %116 : vector<2x1x128xf32>
    %118 = vector.broadcast %110 : vector<2x1x128xf32> to vector<2x8x128xf32>
    %119 = arith.subf %106, %118 : vector<2x8x128xf32>
    %cst_48 = arith.constant 9.99999974E-6 : f32
    %120 = vector.broadcast %cst_48 : f32 to vector<2x1x128xf32>
    %121 = arith.addf %117, %120 : vector<2x1x128xf32>
    %122 = math.rsqrt %121 : vector<2x1x128xf32>
    %123 = vector.broadcast %122 : vector<2x1x128xf32> to vector<2x8x128xf32>
    %124 = arith.mulf %119, %123 : vector<2x8x128xf32>
    %125 = vector.shape_cast %124 : vector<2x8x128xf32> to vector<16x128xf32>
    %126 = vector.broadcast %104 : vector<1x128xf32> to vector<16x128xf32>
    %127 = arith.mulf %125, %126 : vector<16x128xf32>
    %128 = vector.broadcast %105 : vector<1x128xf32> to vector<16x128xf32>
    %129 = arith.addf %127, %128 : vector<16x128xf32>
    %cst_49 = arith.constant 0.000000e+00 : f32
    %130 = vector.broadcast %cst_49 : f32 to vector<16x128xf32>
    %131 = arith.maximumf %129, %130 : vector<16x128xf32>
    %132 = arith.truncf %131 : vector<16x128xf32> to vector<16x128xbf16>
    %c0_50 = arith.constant 0 : index
    %c0_51 = arith.constant 0 : index
    %133 = vector.load %arg6[%c0_50, %c0_51] : memref<128x128xbf16, #tpu.memory_space<vmem>>, vector<128x128xbf16>
    %cst_52 = arith.constant dense<0.000000e+00> : vector<16x128xf32>
    %134 = tpu.matmul %132, %133, %cst_52 {dimension_numbers = #tpu.dot_dimension_numbers<[1], [0], [0], [1], [0, 0, 1, 1], [], []>} : vector<16x128xbf16>, vector<128x128xbf16>, vector<16x128xf32> -> vector<16x128xf32>
    %c9 = arith.constant 9 : index
    %c0_53 = arith.constant 0 : index
    %135 = vector.load %arg10[%c9, %c0_53] : memref<16x128xf32, #tpu.memory_space<vmem>>, vector<1x128xf32>
    %c10 = arith.constant 10 : index
    %c0_54 = arith.constant 0 : index
    %136 = vector.load %arg10[%c10, %c0_54] : memref<16x128xf32, #tpu.memory_space<vmem>>, vector<1x128xf32>
    %137 = vector.shape_cast %134 : vector<16x128xf32> to vector<2x8x128xf32>
    %cst_55 = arith.constant dense<0.000000e+00> : vector<2x128xf32>
    %138 = vector.multi_reduction <add>, %137, %cst_55 [1] : vector<2x8x128xf32> to vector<2x128xf32>
    %139 = vector.shape_cast %138 : vector<2x128xf32> to vector<2x1x128xf32>
    %cst_56 = arith.constant 8.000000e+00 : f32
    %140 = vector.broadcast %cst_56 : f32 to vector<2x1x128xf32>
    %141 = arith.divf %139, %140 : vector<2x1x128xf32>
    %142 = vector.broadcast %141 : vector<2x1x128xf32> to vector<2x8x128xf32>
    %143 = arith.subf %137, %142 : vector<2x8x128xf32>
    %144 = arith.mulf %143, %143 : vector<2x8x128xf32>
    %cst_57 = arith.constant dense<0.000000e+00> : vector<2x128xf32>
    %145 = vector.multi_reduction <add>, %144, %cst_57 [1] : vector<2x8x128xf32> to vector<2x128xf32>
    %146 = vector.shape_cast %145 : vector<2x128xf32> to vector<2x1x128xf32>
    %cst_58 = arith.constant 8.000000e+00 : f32
    %147 = vector.broadcast %cst_58 : f32 to vector<2x1x128xf32>
    %148 = arith.divf %146, %147 : vector<2x1x128xf32>
    %149 = vector.broadcast %141 : vector<2x1x128xf32> to vector<2x8x128xf32>
    %150 = arith.subf %137, %149 : vector<2x8x128xf32>
    %cst_59 = arith.constant 9.99999974E-6 : f32
    %151 = vector.broadcast %cst_59 : f32 to vector<2x1x128xf32>
    %152 = arith.addf %148, %151 : vector<2x1x128xf32>
    %153 = math.rsqrt %152 : vector<2x1x128xf32>
    %154 = vector.broadcast %153 : vector<2x1x128xf32> to vector<2x8x128xf32>
    %155 = arith.mulf %150, %154 : vector<2x8x128xf32>
    %156 = vector.shape_cast %155 : vector<2x8x128xf32> to vector<16x128xf32>
    %157 = vector.broadcast %135 : vector<1x128xf32> to vector<16x128xf32>
    %158 = arith.mulf %156, %157 : vector<16x128xf32>
    %159 = vector.broadcast %136 : vector<1x128xf32> to vector<16x128xf32>
    %160 = arith.addf %158, %159 : vector<16x128xf32>
    %cst_60 = arith.constant 0.000000e+00 : f32
    %161 = vector.broadcast %cst_60 : f32 to vector<16x128xf32>
    %162 = arith.maximumf %160, %161 : vector<16x128xf32>
    %c11 = arith.constant 11 : index
    %c0_61 = arith.constant 0 : index
    %163 = vector.load %arg10[%c11, %c0_61] : memref<16x128xf32, #tpu.memory_space<vmem>>, vector<1x128xf32>
    %164 = arith.truncf %162 : vector<16x128xf32> to vector<16x128xbf16>
    %c0_62 = arith.constant 0 : index
    %c0_63 = arith.constant 0 : index
    %165 = vector.load %arg7[%c0_62, %c0_63] : memref<128x128xbf16, #tpu.memory_space<vmem>>, vector<128x128xbf16>
    %cst_64 = arith.constant dense<0.000000e+00> : vector<16x128xf32>
    %166 = tpu.matmul %164, %165, %cst_64 {dimension_numbers = #tpu.dot_dimension_numbers<[1], [0], [0], [1], [0, 0, 1, 1], [], []>} : vector<16x128xbf16>, vector<128x128xbf16>, vector<16x128xf32> -> vector<16x128xf32>
    %167 = vector.broadcast %163 : vector<1x128xf32> to vector<16x128xf32>
    %168 = arith.addf %166, %167 : vector<16x128xf32>
    %169 = vector.shape_cast %168 : vector<16x128xf32> to vector<2x8x128xf32>
    %cst_65 = arith.constant dense<0.000000e+00> : vector<2x128xf32>
    %170 = vector.multi_reduction <add>, %169, %cst_65 [1] : vector<2x8x128xf32> to vector<2x128xf32>
    %171 = vector.shape_cast %170 : vector<2x128xf32> to vector<2x1x128xf32>
    %cst_66 = arith.constant 8.000000e+00 : f32
    %172 = vector.broadcast %cst_66 : f32 to vector<2x1x128xf32>
    %173 = arith.divf %171, %172 : vector<2x1x128xf32>
    %174 = vector.broadcast %173 : vector<2x1x128xf32> to vector<2x8x128xf32>
    %175 = arith.subf %169, %174 : vector<2x8x128xf32>
    %176 = arith.mulf %175, %175 : vector<2x8x128xf32>
    %cst_67 = arith.constant dense<0.000000e+00> : vector<2x128xf32>
    %177 = vector.multi_reduction <add>, %176, %cst_67 [1] : vector<2x8x128xf32> to vector<2x128xf32>
    %178 = vector.shape_cast %177 : vector<2x128xf32> to vector<2x1x128xf32>
    %cst_68 = arith.constant 8.000000e+00 : f32
    %179 = vector.broadcast %cst_68 : f32 to vector<2x1x128xf32>
    %180 = arith.divf %178, %179 : vector<2x1x128xf32>
    %181 = vector.broadcast %173 : vector<2x1x128xf32> to vector<2x8x128xf32>
    %182 = arith.subf %169, %181 : vector<2x8x128xf32>
    %cst_69 = arith.constant 9.99999974E-6 : f32
    %183 = vector.broadcast %cst_69 : f32 to vector<2x1x128xf32>
    %184 = arith.addf %180, %183 : vector<2x1x128xf32>
    %185 = math.rsqrt %184 : vector<2x1x128xf32>
    %186 = vector.broadcast %185 : vector<2x1x128xf32> to vector<2x8x128xf32>
    %187 = arith.mulf %182, %186 : vector<2x8x128xf32>
    %188 = vector.shape_cast %187 : vector<2x8x128xf32> to vector<16x128xf32>
    %c0_70 = arith.constant 0 : index
    %c0_71 = arith.constant 0 : index
    %189 = vector.load %arg12[%c0_70, %c0_71] : memref<16x128xf32, #tpu.memory_space<vmem>>, vector<16x128xf32>
    tpu.vector_store %arg12[%c0_70, %c0_71], %188 {strides = array<i32>} : memref<16x128xf32, #tpu.memory_space<vmem>>, vector<16x128xf32>,
    %190 = arith.truncf %188 : vector<16x128xf32> to vector<16x128xbf16>
    %c0_72 = arith.constant 0 : index
    %c0_73 = arith.constant 0 : index
    %191 = vector.load %arg8[%c0_72, %c0_73] : memref<128x128xbf16, #tpu.memory_space<vmem>>, vector<128x128xbf16>
    %cst_74 = arith.constant dense<0.000000e+00> : vector<16x128xf32>
    %192 = tpu.matmul %190, %191, %cst_74 {dimension_numbers = #tpu.dot_dimension_numbers<[1], [0], [0], [1], [0, 0, 1, 1], [], []>} : vector<16x128xbf16>, vector<128x128xbf16>, vector<16x128xf32> -> vector<16x128xf32>
    %c12 = arith.constant 12 : index
    %c0_75 = arith.constant 0 : index
    %193 = vector.load %arg10[%c12, %c0_75] : memref<16x128xf32, #tpu.memory_space<vmem>>, vector<1x128xf32>
    %c13 = arith.constant 13 : index
    %c0_76 = arith.constant 0 : index
    %194 = vector.load %arg10[%c13, %c0_76] : memref<16x128xf32, #tpu.memory_space<vmem>>, vector<1x128xf32>
    %195 = vector.shape_cast %192 : vector<16x128xf32> to vector<2x8x128xf32>
    %cst_77 = arith.constant dense<0.000000e+00> : vector<2x128xf32>
    %196 = vector.multi_reduction <add>, %195, %cst_77 [1] : vector<2x8x128xf32> to vector<2x128xf32>
    %197 = vector.shape_cast %196 : vector<2x128xf32> to vector<2x1x128xf32>
    %cst_78 = arith.constant 8.000000e+00 : f32
    %198 = vector.broadcast %cst_78 : f32 to vector<2x1x128xf32>
    %199 = arith.divf %197, %198 : vector<2x1x128xf32>
    %200 = vector.broadcast %199 : vector<2x1x128xf32> to vector<2x8x128xf32>
    %201 = arith.subf %195, %200 : vector<2x8x128xf32>
    %202 = arith.mulf %201, %201 : vector<2x8x128xf32>
    %cst_79 = arith.constant dense<0.000000e+00> : vector<2x128xf32>
    %203 = vector.multi_reduction <add>, %202, %cst_79 [1] : vector<2x8x128xf32> to vector<2x128xf32>
    %204 = vector.shape_cast %203 : vector<2x128xf32> to vector<2x1x128xf32>
    %cst_80 = arith.constant 8.000000e+00 : f32
    %205 = vector.broadcast %cst_80 : f32 to vector<2x1x128xf32>
    %206 = arith.divf %204, %205 : vector<2x1x128xf32>
    %207 = vector.broadcast %199 : vector<2x1x128xf32> to vector<2x8x128xf32>
    %208 = arith.subf %195, %207 : vector<2x8x128xf32>
    %cst_81 = arith.constant 9.99999974E-6 : f32
    %209 = vector.broadcast %cst_81 : f32 to vector<2x1x128xf32>
    %210 = arith.addf %206, %209 : vector<2x1x128xf32>
    %211 = math.rsqrt %210 : vector<2x1x128xf32>
    %212 = vector.broadcast %211 : vector<2x1x128xf32> to vector<2x8x128xf32>
    %213 = arith.mulf %208, %212 : vector<2x8x128xf32>
    %214 = vector.shape_cast %213 : vector<2x8x128xf32> to vector<16x128xf32>
    %215 = vector.broadcast %193 : vector<1x128xf32> to vector<16x128xf32>
    %216 = arith.mulf %214, %215 : vector<16x128xf32>
    %217 = vector.broadcast %194 : vector<1x128xf32> to vector<16x128xf32>
    %218 = arith.addf %216, %217 : vector<16x128xf32>
    %cst_82 = arith.constant 0.000000e+00 : f32
    %219 = vector.broadcast %cst_82 : f32 to vector<16x128xf32>
    %220 = arith.maximumf %218, %219 : vector<16x128xf32>
    %c14 = arith.constant 14 : index
    %c0_83 = arith.constant 0 : index
    %221 = vector.load %arg10[%c14, %c0_83] : memref<16x128xf32, #tpu.memory_space<vmem>>, vector<1x128xf32>
    %222 = arith.truncf %220 : vector<16x128xf32> to vector<16x128xbf16>
    %c0_84 = arith.constant 0 : index
    %c0_85 = arith.constant 0 : index
    %223 = vector.load %arg9[%c0_84, %c0_85] : memref<128x128xbf16, #tpu.memory_space<vmem>>, vector<128x128xbf16>
    %cst_86 = arith.constant dense<0.000000e+00> : vector<16x128xf32>
    %224 = tpu.matmul %222, %223, %cst_86 {dimension_numbers = #tpu.dot_dimension_numbers<[1], [0], [0], [1], [0, 0, 1, 1], [], []>} : vector<16x128xbf16>, vector<128x128xbf16>, vector<16x128xf32> -> vector<16x128xf32>
    %225 = vector.broadcast %221 : vector<1x128xf32> to vector<16x128xf32>
    %226 = arith.addf %224, %225 : vector<16x128xf32>
    %227 = arith.mulf %226, %226 : vector<16x128xf32>
    %cst_87 = arith.constant dense<0.000000e+00> : vector<16xf32>
    %228 = vector.multi_reduction <add>, %227, %cst_87 [1] : vector<16x128xf32> to vector<16xf32>
    %229 = vector.shape_cast %228 : vector<16xf32> to vector<16x1xf32>
    %cst_88 = arith.constant 1.000000e-24 : f32
    %230 = vector.broadcast %cst_88 : f32 to vector<16x1xf32>
    %231 = arith.maximumf %229, %230 : vector<16x1xf32>
    %232 = math.rsqrt %231 : vector<16x1xf32>
    %233 = vector.broadcast %232 : vector<16x1xf32> to vector<16x128xf32>
    %234 = arith.mulf %226, %233 : vector<16x128xf32>
    %235 = vector.shape_cast %234 : vector<16x128xf32> to vector<2x8x128xf32>
    %236 = arith.mulf %100, %100 : vector<16x128xf32>
    %cst_89 = arith.constant dense<0.000000e+00> : vector<16xf32>
    %237 = vector.multi_reduction <add>, %236, %cst_89 [1] : vector<16x128xf32> to vector<16xf32>
    %238 = vector.shape_cast %237 : vector<16xf32> to vector<16x1xf32>
    %cst_90 = arith.constant 1.000000e-24 : f32
    %239 = vector.broadcast %cst_90 : f32 to vector<16x1xf32>
    %240 = arith.maximumf %238, %239 : vector<16x1xf32>
    %241 = math.rsqrt %240 : vector<16x1xf32>
    %242 = vector.broadcast %241 : vector<16x1xf32> to vector<16x128xf32>
    %243 = arith.mulf %100, %242 : vector<16x128xf32>
    %244 = vector.shape_cast %243 : vector<16x128xf32> to vector<2x8x128xf32>
    %245 = vector.extract_strided_slice %235 {offsets = [0, 0, 0], sizes = [1, 8, 128], strides = [1, 1, 1]} : vector<2x8x128xf32> to vector<1x8x128xf32>
    %246 = vector.shape_cast %245 : vector<1x8x128xf32> to vector<8x128xf32>
    %247 = vector.extract_strided_slice %244 {offsets = [1, 0, 0], sizes = [1, 8, 128], strides = [1, 1, 1]} : vector<2x8x128xf32> to vector<1x8x128xf32>
    %248 = vector.shape_cast %247 : vector<1x8x128xf32> to vector<8x128xf32>
    %249 = arith.mulf %246, %248 : vector<8x128xf32>
    %cst_91 = arith.constant dense<0.000000e+00> : vector<8xf32>
    %250 = vector.multi_reduction <add>, %249, %cst_91 [1] : vector<8x128xf32> to vector<8xf32>
    %251 = vector.shape_cast %250 : vector<8xf32> to vector<8x1xf32>
    %252 = vector.extract_strided_slice %235 {offsets = [1, 0, 0], sizes = [1, 8, 128], strides = [1, 1, 1]} : vector<2x8x128xf32> to vector<1x8x128xf32>
    %253 = vector.shape_cast %252 : vector<1x8x128xf32> to vector<8x128xf32>
    %254 = vector.extract_strided_slice %244 {offsets = [0, 0, 0], sizes = [1, 8, 128], strides = [1, 1, 1]} : vector<2x8x128xf32> to vector<1x8x128xf32>
    %255 = vector.shape_cast %254 : vector<1x8x128xf32> to vector<8x128xf32>
    %256 = arith.mulf %253, %255 : vector<8x128xf32>
    %cst_92 = arith.constant dense<0.000000e+00> : vector<8xf32>
    %257 = vector.multi_reduction <add>, %256, %cst_92 [1] : vector<8x128xf32> to vector<8xf32>
    %258 = vector.shape_cast %257 : vector<8xf32> to vector<8x1xf32>
    %259 = arith.addf %251, %258 : vector<8x1xf32>
    %cst_93 = arith.constant 2.000000e+00 : f32
    %260 = vector.broadcast %cst_93 : f32 to vector<8x1xf32>
    %261 = arith.mulf %260, %259 : vector<8x1xf32>
    %cst_94 = arith.constant 4.000000e+00 : f32
    %262 = vector.broadcast %cst_94 : f32 to vector<8x1xf32>
    %263 = arith.subf %262, %261 : vector<8x1xf32>
    %cst_95 = arith.constant dense<0.000000e+00> : vector<1xf32>
    %264 = vector.multi_reduction <add>, %263, %cst_95 [0] : vector<8x1xf32> to vector<1xf32>
    %265 = vector.shape_cast %264 : vector<1xf32> to vector<1x1xf32>
    %cst_96 = arith.constant 8.000000e+00 : f32
    %266 = vector.broadcast %cst_96 : f32 to vector<1x1xf32>
    %267 = arith.divf %265, %266 : vector<1x1xf32>
    %c0_97 = arith.constant 0 : index
    %c0_98 = arith.constant 0 : index
    %268 = vector.load %arg11[%c0_97, %c0_98] : memref<1x1xf32, #tpu.memory_space<vmem>>, vector<1x1xf32>
    tpu.vector_store %arg11[%c0_97, %c0_98], %267 {strides = array<i32>} : memref<1x1xf32, #tpu.memory_space<vmem>>, vector<1x1xf32>,
    return
  }
}

</mosaic_0001>

<bundles_post_ra>
// kernel: byol_forward.3
= control target key start
LH: loop header
LB: loop body
LE: loop exit
PB: predicated region body
PF: predicated region fallthrough
CT: control target
= control target key end

     0   :  { %vm47_vm0 = vcmask 1043456   ;;  %vm12_vm1 = vcmask 31744   ;;  %v167_v40 = vmov 0.0   ;;  %v96_v41 = vlaneseq  ;;  %s236_s0 = inlined_call_operand.vmem [shape: f32[8,4,256], index: 0, kind: input, shape index: {}]   ;;  %s237_s1 = inlined_call_operand.vmem [shape: f32[8,4], index: 1, kind: output, shape index: {}]  }
   0x1   :  { %v14_v0 = vld [vmem:[%s236_s0] sm:$0xff]  ;;  %v16_v1 = vld [vmem:[%s236_s0 + $0x10] sm:$0xff]  ;;  %v15_v2 = vld [vmem:[%s236_s0 + $0x8] sm:$0xff]  ;;  %13 = vst.msk [vmem:[%s237_s1] sm:$0xff] %vm12_vm1, %v167_v40  ;;  %vm130_vm2 = vcmask 1041409   ;;  %vm132_vm3 = vcmask 1042434  }
   0x2   :  { %v31_v3 = vcombine.high %v14_v0, %v14_v0  ;;  %v48_v4 = vsel %vm47_vm0, %v14_v0, 0.0  ;;  %v33_v5 = vcombine.high %v16_v1, %v16_v1  ;;  %v58_v6 = vsel %vm47_vm0, %v16_v1, 0.0  ;;  %v17_v7 = vld [vmem:[%s236_s0 + $0x18] sm:$0xff]  ;;  %v18_v8 = vld [vmem:[%s236_s0 + $0x20] sm:$0xff]  ;;  %v19_v12 = vld [vmem:[%s236_s0 + $0x28] sm:$0xff] }
   0x3   :  { %v32_v9 = vcombine.high %v15_v2, %v15_v2  ;;  %v53_v10 = vsel %vm47_vm0, %v15_v2, 0.0  ;;  %v34_v11 = vcombine.high %v17_v7, %v17_v7  ;;  %v63_v15 = vsel %vm47_vm0, %v17_v7, 0.0  ;;  %v20_v21 = vld [vmem:[%s236_s0 + $0x30] sm:$0xff]  ;;  %v21_v22 = vld [vmem:[%s236_s0 + $0x38] sm:$0xff] }
   0x4   :  { %v49_v13 = vsel %vm47_vm0, %v31_v3, 0.0  ;;  %v59_v14 = vsel %vm47_vm0, %v33_v5, 0.0  ;;  %v35_v16 = vcombine.high %v18_v8, %v18_v8  ;;  %v36_v23 = vcombine.high %v19_v12, %v19_v12 }
   0x5   :  { %v50_v17 = vadd.f32 %v49_v13, %v48_v4  ;;  %v60_v18 = vadd.f32 %v59_v14, %v58_v6  ;;  %v54_v19 = vsel %vm47_vm0, %v32_v9, 0.0  ;;  %v64_v20 = vsel %vm47_vm0, %v34_v11, 0.0 }
   0x6   :  { %v55_v24 = vadd.f32 %v54_v19, %v53_v10  ;;  %v65_v25 = vadd.f32 %v64_v20, %v63_v15  ;;  %v68_v26 = vsel %vm47_vm0, %v18_v8, 0.0  ;;  %v69_v27 = vsel %vm47_vm0, %v35_v16, 0.0 }
   0x7   :  { %51 = vadd.xlane.f32.xlu0 %v50_v17  ;;  %61 = vadd.xlane.f32.xlu1 %v60_v18  ;;  %v73_v28 = vsel %vm47_vm0, %v19_v12, 0.0  ;;  %v74_v29 = vsel %vm47_vm0, %v36_v23, 0.0  ;;  %v37_v30 = vcombine.high %v20_v21, %v20_v21  ;;  %v38_v31 = vcombine.high %v21_v22, %v21_v22 }
   0x8   :  { %v70_v32 = vadd.f32 %v69_v27, %v68_v26  ;;  %v75_v33 = vadd.f32 %v74_v29, %v73_v28  ;;  %v78_v34 = vsel %vm47_vm0, %v20_v21, 0.0  ;;  %v83_v36 = vsel %vm47_vm0, %v21_v22, 0.0  ;;  %v22_v2 = vld [vmem:[%s237_s1] sm:$0xff] }
   0x9   :  { %v79_v35 = vsel %vm47_vm0, %v37_v30, 0.0  ;;  %v84_v37 = vsel %vm47_vm0, %v38_v31, 0.0  ;;  %v97_v42 = vand.u32 127, %v96_v41  ;;  %v99_v43 = vshrl.u32 %v96_v41, 7 }
   0xa   :  { %v80_v38 = vadd.f32 %v79_v35, %v78_v34  ;;  %v85_v39 = vadd.f32 %v84_v37, %v83_v36  ;;  %vm134_vm4 = vcmask 1043459   ;;  %vm136_vm5 = vcmask 1044484  }
   0xb   :  { %56 = vadd.xlane.f32.xlu0 %v55_v24  ;;  %66 = vadd.xlane.f32.xlu1 %v65_v25  ;;  %v100_v46 = vsub.s32 %v97_v42, %v99_v43  ;;  %vm138_vm6 = vcmask 1045509   ;;  %vm140_vm7 = vcmask 1046534   ;;  %vm142_vm8 = vcmask 1047559  }
   0xf   :  { %71 = vadd.xlane.f32.xlu0 %v70_v32  ;;  %76 = vadd.xlane.f32.xlu1 %v75_v33 }
  0x13   :  { %81 = vadd.xlane.f32.xlu0 %v80_v38  ;;  %86 = vadd.xlane.f32.xlu1 %v85_v39 }
  0x90   :  { %v52_v44 = vpop.xlane.xlu0 %51  ;;  %v62_v45 = vpop.xlane.xlu1 %61 }
  0x91   :  { %v101_v49 = vrot.slane %v52_v44, %v100_v46  ;;  %v109_v52 = vrot.slane %v62_v45, %v100_v46 }
  0x94   :  { %v57_v47 = vpop.xlane.xlu0 %56  ;;  %v67_v48 = vpop.xlane.xlu1 %66 }
  0x95   :  { %v105_v50 = vrot.slane %v57_v47, %v100_v46  ;;  %v113_v51 = vrot.slane %v67_v48, %v100_v46 }
  0x97   :  { %v131_v53 = vsel %vm130_vm2, %v105_v50, %v101_v49 }
  0x98   :  { %v133_v54 = vsel %vm132_vm3, %v109_v52, %v131_v53  ;;  %v72_v55 = vpop.xlane.xlu0 %71  ;;  %v77_v56 = vpop.xlane.xlu1 %76 }
  0x99   :  { %v135_v57 = vsel %vm134_vm4, %v113_v51, %v133_v54  ;;  %v117_v58 = vrot.slane %v72_v55, %v100_v46  ;;  %v121_v59 = vrot.slane %v77_v56, %v100_v46 }
  0x9b   :  { %v137_v60 = vsel %vm136_vm5, %v117_v58, %v135_v57 }
  0x9c   :  { %v82_v61 = vpop.xlane.xlu0 %81  ;;  %v87_v62 = vpop.xlane.xlu1 %86  ;;  %v139_v1 = vsel %vm138_vm6, %v121_v59, %v137_v60 }
  0x9d   :  { %v125_v63 = vrot.slane %v82_v61, %v100_v46  ;;  %v129_v0 = vrot.slane %v87_v62, %v100_v46 }
  0x9f   :  { %v141_v3 = vsel %vm140_vm7, %v125_v63, %v139_v1 }
  0xa0   :  { %v143_v4 = vsel %vm142_vm8, %v129_v0, %v141_v3 }
  0xa1   :  { %v145_v5 = vadd.f32 %v143_v4, %v22_v2 }
  0xa3   :  { %147 = vst.msk [vmem:[%s237_s1] sm:$0xff] %vm12_vm1, %v145_v5 }
  0xaa   :  { %v151_v6 = vld [vmem:[%s237_s1] sm:$0xff] }
  0xab   :  { %v152_v7 = vmul.f32 0.00390625, %v151_v6 }
  0xad   :  { %153 = vst.msk [vmem:[%s237_s1] sm:$0xff] %vm12_vm1, %v152_v7 }

// kernel: byol_forward.5
= control target key start
LH: loop header
LB: loop body
LE: loop exit
PB: predicated region body
PF: predicated region fallthrough
CT: control target
= control target key end

     0   :  { %vm60_vm0 = vcmask 1041408   ;;  %v1842_v3 = vmov 0   ;;  %v1843_v7 = vmov 0.0   ;;  %vm56_vm1 = vcmask 31744   ;;  %s2278_s0 = inlined_call_operand.vmem [shape: f32[16,4], index: 0, kind: input, shape index: {}]   ;;  %s2279_s1 = inlined_call_operand.vmem [shape: bf16[4,256], index: 1, kind: input, shape index: {}]   ;;  %s2280_s2 = inlined_call_operand.vmem [shape: bf16[128,128], index: 2, kind: input, shape index: {}]   ;;  %s2281_s3 = inlined_call_operand.vmem [shape: bf16[128,128], index: 3, kind: input, shape index: {}]   ;;  %s2282_s4 = inlined_call_operand.vmem [shape: bf16[128,128], index: 4, kind: input, shape index: {}]   ;;  %s2283_s5 = inlined_call_operand.vmem [shape: bf16[128,128], index: 5, kind: input, shape index: {}]   ;;  %s2284_s6 = inlined_call_operand.vmem [shape: bf16[128,128], index: 6, kind: input, shape index: {}]   ;;  %s2285_s7 = inlined_call_operand.vmem [shape: bf16[128,128], index: 7, kind: input, shape index: {}]   ;;  %s2286_s8 = inlined_call_operand.vmem [shape: bf16[128,128], index: 8, kind: input, shape index: {}]   ;;  %s2287_s9 = inlined_call_operand.vmem [shape: bf16[128,128], index: 9, kind: input, shape index: {}]   ;;  %s2288_s10 = inlined_call_operand.vmem [shape: f32[16,128], index: 10, kind: input, shape index: {}]   ;;  %s2289_s11 = inlined_call_operand.hbm [shape: f32[1,1], index: 11, kind: output, shape index: {0}]   ;;  %s2290_s12 = inlined_call_operand.vmem [shape: f32[16,128], index: 12, kind: output, shape index: {1}]   ;;  %s2291_s13 = inlined_call_operand.vmem [shape: f32[16,128], index: 13, kind: output, shape index: {2}]  }
   0x1   :  { %v1402_v0 = vld.sshfl [vmem:[%s2279_s1] sm:$0x33 pattern:$0x76325410]  ;;  %99 = vmatprep.mubr.bf16.mxu0 %v1842_v3  ;;  %v44_v5 = vld [vmem:[%s2278_s0 + $0x8] sm:$0xff]  ;;  %v1720_v6 = vld [vmem:[%s2280_s2 + $0x38] sm:$0xff]   ;;  %1556 = vmatprep.subr.bf16.mxu1 %v1843_v7 }
   0x2   :  { %v55_v1 = vcombine.high %v1402_v0, %v1402_v0  ;;  %v62_v2 = vsel %vm60_vm0, %v1402_v0, 0  ;;  %v43_v4 = vld [vmem:[%s2278_s0] sm:$0xff]  ;;  %1557 = vmatpush3.bf16.msra.mxu1 %v1720_v6  ;;  %v1721_v9 = vld [vmem:[%s2280_s2 + $0x30] sm:$0xff]   ;;  %v1722_v10 = vld [vmem:[%s2280_s2 + $0x28] sm:$0xff]  }
   0x3   :  { %v45_v8 = vpack.c.bf16 %v44_v5, %v43_v4  ;;  %1558 = vmatprep.subr.bf16.mxu1 %v1843_v7  ;;  %v1723_v11 = vld [vmem:[%s2280_s2 + $0x20] sm:$0xff]   ;;  %v1724_v12 = vld [vmem:[%s2280_s2 + $0x18] sm:$0xff]   ;;  %v1725_v13 = vld [vmem:[%s2280_s2 + $0x10] sm:$0xff]  }
   0x4   :  { %1403 = vmatprep.subr.msk.bf16.mxu0 %vm60_vm0, %v55_v1 }
   0x5   :  { %82 = vmatpush1.bf16.msra.mxu0 %v62_v2 }
   0x6   :  { %1576 = vmatprep.subr.bf16.mxu0 %v1843_v7  ;;  %1559 = vmatpush3.bf16.msra.mxu1 %v1721_v9 }
   0x7   :  { %1560 = vmatprep.subr.bf16.mxu1 %v1843_v7 }
   0x8   :  { %1404 = vmatmul.mubr.msk.bf16.vlgmr.msra.gmra.mxu0 %vm56_vm1, %v45_v8 }
   0xa   :  { %1561 = vmatpush3.bf16.msra.mxu1 %v1722_v10 }
   0xb   :  { %1562 = vmatprep.subr.bf16.mxu1 %v1843_v7 }
   0xe   :  { %1563 = vmatpush3.bf16.msra.mxu1 %v1723_v11 }
   0xf   :  { %1564 = vmatprep.subr.bf16.mxu1 %v1843_v7 }
  0x12   :  { %1565 = vmatpush3.bf16.msra.mxu1 %v1724_v12 }
  0x13   :  { %1566 = vmatprep.subr.bf16.mxu1 %v1843_v7 }
  0x16   :  { %1567 = vmatpush3.bf16.msra.mxu1 %v1725_v13 }
  0x17   :  { %1568 = vmatprep.subr.bf16.mxu1 %v1843_v7 }
  0x18   :  { %19 = vsyncpa [#allocation3], 0  ;;  %v1726_v14 = vld [vmem:[%s2280_s2 + $0x8] sm:$0xff]   ;;  %v1727_v15 = vld [vmem:[%s2280_s2] sm:$0xff]   ;;  %vm1844_vm2 = vmmov 0   ;;  %vm1378_vm3 = vcmask 0  }
  0x19   :  { %1572 = vmatprep.mubr.msk.bf16.mxu1 %vm1844_vm2, %v1843_v7  ;;  %1592 = vmatprep.mubr.msk.bf16.mxu0 %vm1844_vm2, %v1843_v7  ;;  %v1406_v17 = vld [vmem:[%s2288_s10 + $0x6] ss:$0 sm:$0xff]  ;;  %v1405_v18 = vld [vmem:[%s2288_s10] ss:$0 sm:$0xff]  ;;  %v1728_v28 = vld [vmem:[%s2281_s3 + $0x38] sm:$0xff]  }
  0x1a   :  { %1569 = vmatpush3.bf16.msra.mxu1 %v1726_v14  ;;  %1577 = vmatpush3.bf16.msra.mxu0 %v1728_v28  ;;  %v1729_v29 = vld [vmem:[%s2281_s3 + $0x30] sm:$0xff]   ;;  %v1730_v30 = vld [vmem:[%s2281_s3 + $0x28] sm:$0xff]   ;;  %v1731_v31 = vld [vmem:[%s2281_s3 + $0x20] sm:$0xff]  }
  0x1b   :  { %1570 = vmatprep.subr.bf16.mxu1 %v1843_v7  ;;  %1578 = vmatprep.subr.bf16.mxu0 %v1843_v7  ;;  %v1732_v32 = vld [vmem:[%s2281_s3 + $0x18] sm:$0xff]   ;;  %v1733_v33 = vld [vmem:[%s2281_s3 + $0x10] sm:$0xff]   ;;  %v1734_v34 = vld [vmem:[%s2281_s3 + $0x8] sm:$0xff]  }
  0x1c   :  { %v1735_v35 = vld [vmem:[%s2281_s3] sm:$0xff]   ;;  %v1737_v28 = vld [vmem:[%s2283_s5 + $0x30] sm:$0xff]  }
  0x1d   :  { %v1415_v12 = vld [vmem:[%s2288_s10 + $0x1] ss:$0 sm:$0xff] }
  0x1e   :  { %1571 = vmatpush3.bf16.msra.mxu1 %v1727_v15  ;;  %1579 = vmatpush3.bf16.msra.mxu0 %v1729_v29  ;;  %v1738_v29 = vld [vmem:[%s2283_s5 + $0x28] sm:$0xff]  }
  0x1f   :  { %1596 = vmatprep.subr.bf16.mxu1 %v1843_v7  ;;  %1580 = vmatprep.subr.bf16.mxu0 %v1843_v7 }
  0x22   :  { %1581 = vmatpush3.bf16.msra.mxu0 %v1730_v30  ;;  %v1739_v30 = vld [vmem:[%s2283_s5 + $0x20] sm:$0xff]  }
  0x23   :  { %1582 = vmatprep.subr.bf16.mxu0 %v1843_v7 }
  0x26   :  { %1583 = vmatpush3.bf16.msra.mxu0 %v1731_v31  ;;  %v1740_v31 = vld [vmem:[%s2283_s5 + $0x18] sm:$0xff]  }
  0x27   :  { %1584 = vmatprep.subr.bf16.mxu0 %v1843_v7 }
  0x2a   :  { %1585 = vmatpush3.bf16.msra.mxu0 %v1732_v32  ;;  %v1741_v32 = vld [vmem:[%s2283_s5 + $0x10] sm:$0xff]  }
  0x2b   :  { %1586 = vmatprep.subr.bf16.mxu0 %v1843_v7 }
  0x2e   :  { %1587 = vmatpush3.bf16.msra.mxu0 %v1733_v33  ;;  %v1742_v33 = vld [vmem:[%s2283_s5 + $0x8] sm:$0xff]  }
  0x2f   :  { %1588 = vmatprep.subr.bf16.mxu0 %v1843_v7 }
  0x32   :  { %1589 = vmatpush3.bf16.msra.mxu0 %v1734_v34  ;;  %v1743_v34 = vld [vmem:[%s2283_s5] sm:$0xff]  }
  0x33   :  { %1590 = vmatprep.subr.bf16.mxu0 %v1843_v7 }
  0x36   :  { %1591 = vmatpush3.bf16.msra.mxu0 %v1735_v35  ;;  %v1744_v35 = vld [vmem:[%s2282_s4 + $0x38] sm:$0xff]  }
  0x37   :  { %1616 = vmatprep.subr.bf16.mxu0 %v1843_v7 }
  0xc8   :  { %v101_v16 = vpop.f32.mrf.mxu0 }
  0xc9   :  { %v115_v22 = vadd.f32 %v1405_v18, %v101_v16  ;;  %v1416_v16 = vld [vmem:[%s2288_s10 + $0x2] ss:$0 sm:$0xff] }
  0xca   :  { %v103_v19 = vpop.f32.mrf.mxu0 }
  0xcb   :  { %v1969_v20 = vadd.f32 %v1406_v17, %v103_v19 }
  0xcc   :  { %v105_v21 = vpop.f32.mrf.mxu0 }
  0xcd   :  { %124 = vst [vmem:[%s2291_s13] sm:$0xff] %v1969_v20  ;;  %v116_v23 = vadd.f32 %v1405_v18, %v105_v21 }
  0xce   :  { %v107_v24 = vpop.f32.mrf.mxu0 }
  0xcf   :  { %v126_v25 = vpack.c.bf16 %v116_v23, %v115_v22  ;;  %v1975_v26 = vadd.f32 %v1406_v17, %v107_v24  ;;  %v1736_v24 = vld [vmem:[%s2283_s5 + $0x38] sm:$0xff]  }
  0xd1   :  { %125 = vst [vmem:[%s2291_s13 + $0x8] sm:$0xff] %v1975_v26  ;;  %v596_v27 = vpack.c.bf16 %v1975_v26, %v1969_v20  ;;  %1573 = vmatmul.mubr.bf16.vlgmr.msra.gmra.mxu1 %v126_v25  ;;  %v1746_v20 = vld [vmem:[%s2282_s4 + $0x28] sm:$0xff]   ;;  %v1747_v26 = vld [vmem:[%s2282_s4 + $0x20] sm:$0xff]  }
  0xd2   :  { %1612 = vmatprep.mubr.msk.bf16.mxu1 %vm1844_vm2, %v1843_v7  ;;  %1597 = vmatpush3.bf16.msra.mxu1 %v1744_v35 }
  0xd3   :  { %1598 = vmatprep.subr.bf16.mxu1 %v1843_v7 }
 0x191   :  { %v225_v36 = vpop.f32.mrf.mxu1 }
 0x192   :  { %v234_v37 = vrot.slane %v225_v36, 4 }
 0x193   :  { %v1574_v38 = vpop.f32.mrf.mxu1 }
 0x194   :  { %v235_v39 = vadd.f32 %v234_v37, %v225_v36  ;;  %v1749_v37 = vld [vmem:[%s2282_s4 + $0x10] sm:$0xff]   ;;  %v1750_v38 = vld [vmem:[%s2282_s4 + $0x8] sm:$0xff]  }
 0x195   :  { %v228_v40 = vpop.f32.mrf.mxu1 }
 0x196   :  { %v236_v41 = vrot.slane %v235_v39, 2  ;;  %v240_v42 = vrot.slane %v228_v40, 4 }
 0x197   :  { %v1575_v43 = vpop.f32.mrf.mxu1 }
 0x198   :  { %v237_v44 = vadd.f32 %v236_v41, %v235_v39  ;;  %v241_v45 = vadd.f32 %v240_v42, %v228_v40  ;;  %v1751_v39 = vld [vmem:[%s2282_s4] sm:$0xff]  }
 0x19a   :  { %v238_v46 = vrot.slane %v237_v44, 1  ;;  %v242_v47 = vrot.slane %v241_v45, 2 }
 0x19c   :  { %v239_v48 = vadd.f32 %v238_v46, %v237_v44  ;;  %v243_v49 = vadd.f32 %v242_v47, %v241_v45 }
 0x19e   :  { %v247_v50 = vmul.f32 0.125, %v239_v48  ;;  %v244_v51 = vrot.slane %v243_v49, 1 }
 0x1a0   :  { %v249_v52 = vsub.f32 %v225_v36, %v247_v50  ;;  %v245_v53 = vadd.f32 %v244_v51, %v243_v49  ;;  %v1745_v36 = vld [vmem:[%s2282_s4 + $0x30] sm:$0xff]  }
 0x1a1   :  { %1599 = vmatpush3.bf16.msra.mxu1 %v1745_v36 }
 0x1a2   :  { %v251_v54 = vmul.f32 %v249_v52, %v249_v52  ;;  %v248_v55 = vmul.f32 0.125, %v245_v53  ;;  %1600 = vmatprep.subr.bf16.mxu1 %v1843_v7 }
 0x1a4   :  { %v253_v56 = vrot.slane %v251_v54, 4  ;;  %v250_v57 = vsub.f32 %v228_v40, %v248_v55 }
 0x1a5   :  { %1601 = vmatpush3.bf16.msra.mxu1 %v1746_v20  ;;  %v1425_v20 = vld [vmem:[%s2288_s10 + $0x3] ss:$0 sm:$0xff] }
 0x1a6   :  { %v254_v58 = vadd.f32 %v253_v56, %v251_v54  ;;  %v252_v59 = vmul.f32 %v250_v57, %v250_v57  ;;  %1602 = vmatprep.subr.bf16.mxu1 %v1843_v7 }
 0x1a8   :  { %v255_v60 = vrot.slane %v254_v58, 2  ;;  %v259_v61 = vrot.slane %v252_v59, 4 }
 0x1a9   :  { %1603 = vmatpush3.bf16.msra.mxu1 %v1747_v26 }
 0x1aa   :  { %v256_v62 = vadd.f32 %v255_v60, %v254_v58  ;;  %v260_v63 = vadd.f32 %v259_v61, %v252_v59  ;;  %1604 = vmatprep.subr.bf16.mxu1 %v1843_v7 }
 0x1ac   :  { %v257_v0 = vrot.slane %v256_v62, 1  ;;  %v261_v1 = vrot.slane %v260_v63, 2 }
 0x1ae   :  { %v258_v2 = vadd.f32 %v257_v0, %v256_v62  ;;  %v262_v3 = vadd.f32 %v261_v1, %v260_v63 }
 0x1b0   :  { %v265_v4 = vmul.f32 0.125, %v258_v2  ;;  %v263_v5 = vrot.slane %v262_v3, 1 }
 0x1b2   :  { %v267_v6 = vadd.f32 1e-05, %v265_v4  ;;  %v264_v8 = vadd.f32 %v263_v5, %v262_v3 }
 0x1b4   :  { %1784 = vrsqrt.f32 %v267_v6  ;;  %v266_v9 = vmul.f32 0.125, %v264_v8 }
 0x1b6   :  { %v268_v10 = vadd.f32 1e-05, %v266_v9 }
 0x1b8   :  { %1786 = vrsqrt.f32 %v268_v10 }
 0x1c1   :  { %v1785_v11 = vpop.eup %1784 }
 0x1c2   :  { %v271_v13 = vmul.f32 %v1785_v11, %v249_v52 }
 0x1c4   :  { %v277_v14 = vmul.f32 %v1415_v12, %v271_v13 }
 0x1c5   :  { %v1787_v15 = vpop.eup %1786 }
 0x1c6   :  { %v272_v17 = vmul.f32 %v1787_v15, %v250_v57  ;;  %v283_v18 = vadd.f32 %v1416_v16, %v277_v14 }
 0x1c8   :  { %v278_v19 = vmul.f32 %v1415_v12, %v272_v17  ;;  %v285_v22 = vmax.f32 %v283_v18, 0.0 }
 0x1ca   :  { %v284_v21 = vadd.f32 %v1416_v16, %v278_v19 }
 0x1cc   :  { %v286_v23 = vmax.f32 %v284_v21, 0.0 }
 0x1ce   :  { %v287_v25 = vpack.c.bf16 %v286_v23, %v285_v22 }
 0x1d0   :  { %1593 = vmatmul.mubr.bf16.vlgmr.msra.gmra.mxu0 %v287_v25 }
 0x1d1   :  { %1617 = vmatpush3.bf16.msra.mxu0 %v1736_v24  ;;  %1632 = vmatprep.mubr.msk.bf16.mxu0 %vm1844_vm2, %v1843_v7 }
 0x1d2   :  { %1618 = vmatprep.subr.bf16.mxu0 %v1843_v7 }
 0x1d5   :  { %1619 = vmatpush3.bf16.msra.mxu0 %v1737_v28 }
 0x1d6   :  { %1620 = vmatprep.subr.bf16.mxu0 %v1843_v7 }
 0x1d9   :  { %1621 = vmatpush3.bf16.msra.mxu0 %v1738_v29 }
 0x1da   :  { %1622 = vmatprep.subr.bf16.mxu0 %v1843_v7 }
 0x1dd   :  { %1623 = vmatpush3.bf16.msra.mxu0 %v1739_v30 }
 0x1de   :  { %1624 = vmatprep.subr.bf16.mxu0 %v1843_v7 }
 0x1e1   :  { %1625 = vmatpush3.bf16.msra.mxu0 %v1740_v31 }
 0x1e2   :  { %1626 = vmatprep.subr.bf16.mxu0 %v1843_v7 }
 0x1e5   :  { %1627 = vmatpush3.bf16.msra.mxu0 %v1741_v32 }
 0x1e6   :  { %1628 = vmatprep.subr.bf16.mxu0 %v1843_v7 }
 0x1e9   :  { %1629 = vmatpush3.bf16.msra.mxu0 %v1742_v33 }
 0x1ea   :  { %1630 = vmatprep.subr.bf16.mxu0 %v1843_v7 }
 0x1ed   :  { %1631 = vmatpush3.bf16.msra.mxu0 %v1743_v34 }
 0x1ee   :  { %1656 = vmatprep.subr.bf16.mxu0 %v1843_v7 }
 0x1f0   :  { %1633 = vmatmul.mubr.bf16.vlgmr.msra.gmra.mxu0 %v596_v27  ;;  %v1748_v27 = vld [vmem:[%s2282_s4 + $0x18] sm:$0xff]  }
 0x1f1   :  { %1672 = vmatprep.mubr.msk.bf16.mxu0 %vm1844_vm2, %v1843_v7  ;;  %1605 = vmatpush3.bf16.msra.mxu1 %v1748_v27 }
 0x1f2   :  { %1606 = vmatprep.subr.bf16.mxu1 %v1843_v7 }
 0x1f5   :  { %1607 = vmatpush3.bf16.msra.mxu1 %v1749_v37 }
 0x1f6   :  { %1608 = vmatprep.subr.bf16.mxu1 %v1843_v7 }
 0x1f9   :  { %1609 = vmatpush3.bf16.msra.mxu1 %v1750_v38 }
 0x1fa   :  { %1610 = vmatprep.subr.bf16.mxu1 %v1843_v7 }
 0x1fd   :  { %1611 = vmatpush3.bf16.msra.mxu1 %v1751_v39 }
 0x1fe   :  { %1636 = vmatprep.subr.bf16.mxu1 %v1843_v7 }
 0x290   :  { %v386_v40 = vpop.f32.mrf.mxu0 }
 0x291   :  { %v395_v41 = vrot.slane %v386_v40, 4 }
 0x292   :  { %v1594_v42 = vpop.f32.mrf.mxu0 }
 0x293   :  { %v396_v43 = vadd.f32 %v395_v41, %v386_v40  ;;  %v1426_v42 = vld [vmem:[%s2288_s10 + $0x4] ss:$0 sm:$0xff] }
 0x294   :  { %v389_v44 = vpop.f32.mrf.mxu0 }
 0x295   :  { %v397_v45 = vrot.slane %v396_v43, 2  ;;  %v401_v46 = vrot.slane %v389_v44, 4 }
 0x296   :  { %v1595_v47 = vpop.f32.mrf.mxu0 }
 0x297   :  { %v398_v48 = vadd.f32 %v397_v45, %v396_v43  ;;  %v402_v49 = vadd.f32 %v401_v46, %v389_v44 }
 0x299   :  { %v399_v50 = vrot.slane %v398_v48, 1  ;;  %v403_v51 = vrot.slane %v402_v49, 2 }
 0x29b   :  { %v400_v52 = vadd.f32 %v399_v50, %v398_v48  ;;  %v404_v53 = vadd.f32 %v403_v51, %v402_v49 }
 0x29d   :  { %v407_v54 = vmul.f32 0.125, %v400_v52  ;;  %v405_v55 = vrot.slane %v404_v53, 1 }
 0x29f   :  { %v409_v56 = vsub.f32 %v386_v40, %v407_v54  ;;  %v406_v57 = vadd.f32 %v405_v55, %v404_v53 }
 0x2a1   :  { %v411_v58 = vmul.f32 %v409_v56, %v409_v56  ;;  %v408_v59 = vmul.f32 0.125, %v406_v57  ;;  %v1752_v57 = vld [vmem:[%s2284_s6 + $0x38] sm:$0xff]  }
 0x2a3   :  { %v413_v60 = vrot.slane %v411_v58, 4  ;;  %v410_v61 = vsub.f32 %v389_v44, %v408_v59 }
 0x2a5   :  { %v414_v62 = vadd.f32 %v413_v60, %v411_v58  ;;  %v412_v63 = vmul.f32 %v410_v61, %v410_v61 }
 0x2a7   :  { %v415_v0 = vrot.slane %v414_v62, 2  ;;  %v419_v1 = vrot.slane %v412_v63, 4 }
 0x2a9   :  { %v416_v2 = vadd.f32 %v415_v0, %v414_v62  ;;  %v420_v3 = vadd.f32 %v419_v1, %v412_v63  ;;  %v1753_v63 = vld [vmem:[%s2284_s6 + $0x30] sm:$0xff]  }
 0x2ab   :  { %v417_v4 = vrot.slane %v416_v2, 1  ;;  %v421_v5 = vrot.slane %v420_v3, 2 }
 0x2ad   :  { %v418_v6 = vadd.f32 %v417_v4, %v416_v2  ;;  %v422_v8 = vadd.f32 %v421_v5, %v420_v3  ;;  %v1754_v3 = vld [vmem:[%s2284_s6 + $0x28] sm:$0xff]   ;;  %v1755_v5 = vld [vmem:[%s2284_s6 + $0x20] sm:$0xff]  }
 0x2af   :  { %v425_v9 = vmul.f32 0.125, %v418_v6  ;;  %v423_v10 = vrot.slane %v422_v8, 1  ;;  %v1756_v6 = vld [vmem:[%s2284_s6 + $0x18] sm:$0xff]  }
 0x2b0   :  { %v695_v11 = vpop.f32.mrf.mxu0 }
 0x2b1   :  { %v427_v12 = vadd.f32 1e-05, %v425_v9  ;;  %v424_v13 = vadd.f32 %v423_v10, %v422_v8  ;;  %v704_v14 = vrot.slane %v695_v11, 4  ;;  %v1444_v9 = vld [vmem:[%s2288_s10 + $0x7] ss:$0 sm:$0xff]  ;;  %v1757_v10 = vld [vmem:[%s2284_s6 + $0x10] sm:$0xff]  }
 0x2b2   :  { %v1634_v15 = vpop.f32.mrf.mxu0 }
 0x2b3   :  { %1788 = vrsqrt.f32 %v427_v12  ;;  %v426_v16 = vmul.f32 0.125, %v424_v13  ;;  %v705_v17 = vadd.f32 %v704_v14, %v695_v11  ;;  %v1445_v14 = vld [vmem:[%s2288_s10 + $0x8] ss:$0 sm:$0xff] }
 0x2b4   :  { %v698_v18 = vpop.f32.mrf.mxu0  ;;  %v1758_v15 = vld [vmem:[%s2284_s6 + $0x8] sm:$0xff]  }
 0x2b5   :  { %v428_v19 = vadd.f32 1e-05, %v426_v16  ;;  %v706_v21 = vrot.slane %v705_v17, 2  ;;  %v710_v22 = vrot.slane %v698_v18, 4 }
 0x2b6   :  { %v1635_v23 = vpop.f32.mrf.mxu0 }
 0x2b7   :  { %1790 = vrsqrt.f32 %v428_v19  ;;  %v707_v24 = vadd.f32 %v706_v21, %v705_v17  ;;  %v711_v25 = vadd.f32 %v710_v22, %v698_v18  ;;  %v1759_v19 = vld [vmem:[%s2284_s6] sm:$0xff]  }
 0x2b9   :  { %v708_v28 = vrot.slane %v707_v24, 1  ;;  %v712_v29 = vrot.slane %v711_v25, 2 }
 0x2bb   :  { %v709_v30 = vadd.f32 %v708_v28, %v707_v24  ;;  %v713_v31 = vadd.f32 %v712_v29, %v711_v25  ;;  %v1760_v25 = vld [vmem:[%s2285_s7 + $0x38] sm:$0xff]   ;;  %v1761_v28 = vld [vmem:[%s2285_s7 + $0x30] sm:$0xff]   ;;  %v1762_v29 = vld [vmem:[%s2285_s7 + $0x28] sm:$0xff]  }
 0x2bc   :  { %1657 = vmatpush3.bf16.msra.mxu0 %v1760_v25 }
 0x2bd   :  { %v716_v32 = vmul.f32 0.125, %v709_v30  ;;  %v714_v33 = vrot.slane %v713_v31, 1  ;;  %1658 = vmatprep.subr.bf16.mxu0 %v1843_v7  ;;  %v1763_v30 = vld [vmem:[%s2285_s7 + $0x20] sm:$0xff]  }
 0x2bf   :  { %v718_v34 = vsub.f32 %v695_v11, %v716_v32  ;;  %v715_v35 = vadd.f32 %v714_v33, %v713_v31  ;;  %v1764_v31 = vld [vmem:[%s2285_s7 + $0x18] sm:$0xff]   ;;  %v1765_v32 = vld [vmem:[%s2285_s7 + $0x10] sm:$0xff]   ;;  %v1766_v33 = vld [vmem:[%s2285_s7 + $0x8] sm:$0xff]  }
 0x2c0   :  { %v1789_v36 = vpop.eup %1788  ;;  %1659 = vmatpush3.bf16.msra.mxu0 %v1761_v28 }
 0x2c1   :  { %v431_v26 = vmul.f32 %v1789_v36, %v409_v56  ;;  %v720_v27 = vmul.f32 %v718_v34, %v718_v34  ;;  %v717_v37 = vmul.f32 0.125, %v715_v35  ;;  %1660 = vmatprep.subr.bf16.mxu0 %v1843_v7  ;;  %v1427_v35 = vld [vmem:[%s2288_s10 + $0x5] ss:$0 sm:$0xff] }
 0x2c3   :  { %v437_v38 = vmul.f32 %v1425_v20, %v431_v26  ;;  %v722_v39 = vrot.slane %v720_v27, 4  ;;  %v719_v40 = vsub.f32 %v698_v18, %v717_v37 }
 0x2c4   :  { %v1791_v41 = vpop.eup %1790  ;;  %1661 = vmatpush3.bf16.msra.mxu0 %v1762_v29 }
 0x2c5   :  { %v432_v43 = vmul.f32 %v1791_v41, %v410_v61  ;;  %v723_v44 = vadd.f32 %v722_v39, %v720_v27  ;;  %v721_v45 = vmul.f32 %v719_v40, %v719_v40  ;;  %v443_v46 = vadd.f32 %v1426_v42, %v437_v38  ;;  %1662 = vmatprep.subr.bf16.mxu0 %v1843_v7 }
 0x2c7   :  { %v438_v47 = vmul.f32 %v1425_v20, %v432_v43  ;;  %v724_v48 = vrot.slane %v723_v44, 2  ;;  %v728_v49 = vrot.slane %v721_v45, 4  ;;  %v445_v55 = vmax.f32 %v443_v46, 0.0 }
 0x2c8   :  { %1663 = vmatpush3.bf16.msra.mxu0 %v1763_v30 }
 0x2c9   :  { %v444_v50 = vadd.f32 %v1426_v42, %v438_v47  ;;  %v725_v51 = vadd.f32 %v724_v48, %v723_v44  ;;  %v729_v52 = vadd.f32 %v728_v49, %v721_v45  ;;  %1664 = vmatprep.subr.bf16.mxu0 %v1843_v7 }
 0x2cb   :  { %v726_v53 = vrot.slane %v725_v51, 1  ;;  %v730_v54 = vrot.slane %v729_v52, 2  ;;  %v446_v56 = vmax.f32 %v444_v50, 0.0 }
 0x2cc   :  { %1665 = vmatpush3.bf16.msra.mxu0 %v1764_v31 }
 0x2cd   :  { %v727_v58 = vadd.f32 %v726_v53, %v725_v51  ;;  %v731_v59 = vadd.f32 %v730_v54, %v729_v52  ;;  %v448_v60 = vpack.c.bf16 %v446_v56, %v445_v55  ;;  %1666 = vmatprep.subr.bf16.mxu0 %v1843_v7 }
 0x2cf   :  { %v734_v61 = vmul.f32 0.125, %v727_v58  ;;  %v732_v62 = vrot.slane %v731_v59, 1  ;;  %1613 = vmatmul.mubr.bf16.vlgmr.msra.gmra.mxu1 %v448_v60 }
 0x2d0   :  { %1637 = vmatpush3.bf16.msra.mxu1 %v1752_v57  ;;  %1652 = vmatprep.mubr.msk.bf16.mxu1 %vm1844_vm2, %v1843_v7 }
 0x2d1   :  { %v736_v0 = vadd.f32 1e-05, %v734_v61  ;;  %v733_v1 = vadd.f32 %v732_v62, %v731_v59  ;;  %1638 = vmatprep.subr.bf16.mxu1 %v1843_v7  ;;  %1667 = vmatpush3.bf16.msra.mxu0 %v1765_v32 }
 0x2d2   :  { %1668 = vmatprep.subr.bf16.mxu0 %v1843_v7 }
 0x2d3   :  { %1792 = vrsqrt.f32 %v736_v0  ;;  %v735_v2 = vmul.f32 0.125, %v733_v1 }
 0x2d4   :  { %1639 = vmatpush3.bf16.msra.mxu1 %v1753_v63 }
 0x2d5   :  { %v737_v4 = vadd.f32 1e-05, %v735_v2  ;;  %1640 = vmatprep.subr.bf16.mxu1 %v1843_v7  ;;  %1669 = vmatpush3.bf16.msra.mxu0 %v1766_v33 }
 0x2d6   :  { %1670 = vmatprep.subr.bf16.mxu0 %v1843_v7 }
 0x2d7   :  { %1794 = vrsqrt.f32 %v737_v4 }
 0x2d8   :  { %1641 = vmatpush3.bf16.msra.mxu1 %v1754_v3 }
 0x2d9   :  { %1642 = vmatprep.subr.bf16.mxu1 %v1843_v7 }
 0x2dc   :  { %1643 = vmatpush3.bf16.msra.mxu1 %v1755_v5 }
 0x2dd   :  { %1644 = vmatprep.subr.bf16.mxu1 %v1843_v7 }
 0x2e0   :  { %v1793_v8 = vpop.eup %1792  ;;  %1645 = vmatpush3.bf16.msra.mxu1 %v1756_v6 }
 0x2e1   :  { %v740_v11 = vmul.f32 %v1793_v8, %v718_v34  ;;  %1646 = vmatprep.subr.bf16.mxu1 %v1843_v7  ;;  %v1767_v34 = vld [vmem:[%s2285_s7] sm:$0xff]  }
 0x2e2   :  { %1671 = vmatpush3.bf16.msra.mxu0 %v1767_v34 }
 0x2e3   :  { %v746_v12 = vmul.f32 %v1444_v9, %v740_v11  ;;  %1696 = vmatprep.subr.bf16.mxu0 %v1843_v7 }
 0x2e4   :  { %v1795_v13 = vpop.eup %1794  ;;  %1647 = vmatpush3.bf16.msra.mxu1 %v1757_v10 }
 0x2e5   :  { %v741_v16 = vmul.f32 %v1795_v13, %v719_v40  ;;  %1648 = vmatprep.subr.bf16.mxu1 %v1843_v7  ;;  %v752_v17 = vadd.f32 %v1445_v14, %v746_v12 }
 0x2e7   :  { %v747_v18 = vmul.f32 %v1444_v9, %v741_v16  ;;  %v754_v22 = vmax.f32 %v752_v17, 0.0 }
 0x2e8   :  { %1649 = vmatpush3.bf16.msra.mxu1 %v1758_v15 }
 0x2e9   :  { %v753_v21 = vadd.f32 %v1445_v14, %v747_v18  ;;  %1650 = vmatprep.subr.bf16.mxu1 %v1843_v7 }
 0x2eb   :  { %v755_v23 = vmax.f32 %v753_v21, 0.0 }
 0x2ec   :  { %1651 = vmatpush3.bf16.msra.mxu1 %v1759_v19 }
 0x2ed   :  { %v756_v24 = vpack.c.bf16 %v755_v23, %v754_v22  ;;  %1676 = vmatprep.subr.bf16.mxu1 %v1843_v7 }
 0x2ef   :  { %1653 = vmatmul.mubr.bf16.vlgmr.msra.gmra.mxu1 %v756_v24 }
 0x2f0   :  { %1692 = vmatprep.mubr.msk.bf16.mxu1 %vm1844_vm2, %v1843_v7 }
 0x38f   :  { %v551_v36 = vpop.f32.mrf.mxu1 }
 0x390   :  { %v552_v20 = vadd.f32 %v1427_v35, %v551_v36 }
 0x391   :  { %v1614_v26 = vpop.f32.mrf.mxu1 }
 0x392   :  { %v558_v27 = vrot.slane %v552_v20, 4 }
 0x393   :  { %v554_v37 = vpop.f32.mrf.mxu1 }
 0x394   :  { %v559_v38 = vadd.f32 %v558_v27, %v552_v20  ;;  %v555_v39 = vadd.f32 %v1427_v35, %v554_v37 }
 0x395   :  { %v1615_v40 = vpop.f32.mrf.mxu1 }
 0x396   :  { %v560_v41 = vrot.slane %v559_v38, 2  ;;  %v564_v42 = vrot.slane %v555_v39, 4 }
 0x398   :  { %v561_v43 = vadd.f32 %v560_v41, %v559_v38  ;;  %v565_v44 = vadd.f32 %v564_v42, %v555_v39 }
 0x39a   :  { %v566_v45 = vrot.slane %v565_v44, 2  ;;  %v562_v46 = vrot.slane %v561_v43, 1 }
 0x39c   :  { %v567_v47 = vadd.f32 %v566_v45, %v565_v44  ;;  %v563_v48 = vadd.f32 %v562_v46, %v561_v43 }
 0x39e   :  { %v568_v49 = vrot.slane %v567_v47, 1  ;;  %v570_v50 = vmul.f32 0.125, %v563_v48 }
 0x3a0   :  { %v569_v51 = vadd.f32 %v568_v49, %v567_v47  ;;  %v572_v52 = vsub.f32 %v552_v20, %v570_v50 }
 0x3a2   :  { %v571_v53 = vmul.f32 0.125, %v569_v51  ;;  %v574_v54 = vmul.f32 %v572_v52, %v572_v52 }
 0x3a4   :  { %v573_v55 = vsub.f32 %v555_v39, %v571_v53  ;;  %v576_v56 = vrot.slane %v574_v54, 4 }
 0x3a6   :  { %v575_v57 = vmul.f32 %v573_v55, %v573_v55  ;;  %v577_v58 = vadd.f32 %v576_v56, %v574_v54 }
 0x3a8   :  { %v582_v59 = vrot.slane %v575_v57, 4  ;;  %v578_v60 = vrot.slane %v577_v58, 2 }
 0x3aa   :  { %v583_v61 = vadd.f32 %v582_v59, %v575_v57  ;;  %v579_v62 = vadd.f32 %v578_v60, %v577_v58  ;;  %v1455_v59 = vld [vmem:[%s2288_s10 + $0xa] ss:$0 sm:$0xff] }
 0x3ac   :  { %v584_v63 = vrot.slane %v583_v61, 2  ;;  %v580_v0 = vrot.slane %v579_v62, 1 }
 0x3ae   :  { %v585_v1 = vadd.f32 %v584_v63, %v583_v61  ;;  %v581_v2 = vadd.f32 %v580_v0, %v579_v62 }
 0x3af   :  { %v855_v3 = vpop.f32.mrf.mxu1 }
 0x3b0   :  { %v586_v4 = vrot.slane %v585_v1, 1  ;;  %v864_v5 = vrot.slane %v855_v3, 4  ;;  %v588_v6 = vmul.f32 0.125, %v581_v2 }
 0x3b1   :  { %v1654_v8 = vpop.f32.mrf.mxu1 }
 0x3b2   :  { %v587_v9 = vadd.f32 %v586_v4, %v585_v1  ;;  %v865_v10 = vadd.f32 %v864_v5, %v855_v3  ;;  %v590_v11 = vadd.f32 1e-05, %v588_v6  ;;  %v1769_v4 = vld [vmem:[%s2286_s8 + $0x30] sm:$0xff]   ;;  %v1770_v5 = vld [vmem:[%s2286_s8 + $0x28] sm:$0xff]   ;;  %v1771_v6 = vld [vmem:[%s2286_s8 + $0x20] sm:$0xff]  }
 0x3b3   :  { %v858_v12 = vpop.f32.mrf.mxu1  ;;  %v1772_v8 = vld [vmem:[%s2286_s8 + $0x18] sm:$0xff]  }
 0x3b4   :  { %v589_v13 = vmul.f32 0.125, %v587_v9  ;;  %v866_v14 = vrot.slane %v865_v10, 2  ;;  %v870_v15 = vrot.slane %v858_v12, 4  ;;  %1796 = vrsqrt.f32 %v590_v11  ;;  %v1773_v9 = vld [vmem:[%s2286_s8 + $0x10] sm:$0xff]   ;;  %v1775_v11 = vld [vmem:[%s2286_s8] sm:$0xff]  }
 0x3b5   :  { %v1655_v16 = vpop.f32.mrf.mxu1 }
 0x3b6   :  { %v591_v17 = vadd.f32 1e-05, %v589_v13  ;;  %v867_v18 = vadd.f32 %v866_v14, %v865_v10  ;;  %v871_v19 = vadd.f32 %v870_v15, %v858_v12  ;;  %v1774_v10 = vld [vmem:[%s2286_s8 + $0x8] sm:$0xff]  }
 0x3b8   :  { %1798 = vrsqrt.f32 %v591_v17  ;;  %v868_v21 = vrot.slane %v867_v18, 1  ;;  %v872_v22 = vrot.slane %v871_v19, 2 }
 0x3ba   :  { %v869_v23 = vadd.f32 %v868_v21, %v867_v18  ;;  %v873_v24 = vadd.f32 %v872_v22, %v871_v19 }
 0x3bc   :  { %v876_v25 = vmul.f32 0.125, %v869_v23  ;;  %v874_v28 = vrot.slane %v873_v24, 1 }
 0x3be   :  { %v878_v29 = vsub.f32 %v855_v3, %v876_v25  ;;  %v875_v30 = vadd.f32 %v874_v28, %v873_v24  ;;  %v1768_v3 = vld [vmem:[%s2286_s8 + $0x38] sm:$0xff]  }
 0x3bf   :  { %1677 = vmatpush3.bf16.msra.mxu1 %v1768_v3  ;;  %v1783_v3 = vld [vmem:[%s2287_s9] sm:$0xff]  }
 0x3c0   :  { %v880_v31 = vmul.f32 %v878_v29, %v878_v29  ;;  %v877_v32 = vmul.f32 0.125, %v875_v30  ;;  %1678 = vmatprep.subr.bf16.mxu1 %v1843_v7 }
 0x3c1   :  { %v1797_v33 = vpop.eup %1796 }
 0x3c2   :  { %v882_v34 = vrot.slane %v880_v31, 4  ;;  %v879_v35 = vsub.f32 %v858_v12, %v877_v32  ;;  %v2177_v36 = vmul.f32 %v1797_v33, %v572_v52  ;;  %v1456_v12 = vld [vmem:[%s2288_s10 + $0xb] ss:$0 sm:$0xff] }
 0x3c3   :  { %1679 = vmatpush3.bf16.msra.mxu1 %v1769_v4 }
 0x3c4   :  { %v883_v20 = vadd.f32 %v882_v34, %v880_v31  ;;  %v881_v26 = vmul.f32 %v879_v35, %v879_v35  ;;  %v1350_v27 = vmul.f32 %v2177_v36, %v2177_v36  ;;  %1680 = vmatprep.subr.bf16.mxu1 %v1843_v7 }
 0x3c5   :  { %v1799_v37 = vpop.eup %1798 }
 0x3c6   :  { %v884_v38 = vrot.slane %v883_v20, 2  ;;  %v888_v39 = vrot.slane %v881_v26, 4  ;;  %1352 = vadd.xlane.f32.xlu1 %v1350_v27  ;;  %v2181_v40 = vmul.f32 %v1799_v37, %v573_v55  ;;  %v1454_v55 = vld [vmem:[%s2288_s10 + $0x9] ss:$0 sm:$0xff] }
 0x3c7   :  { %1681 = vmatpush3.bf16.msra.mxu1 %v1770_v5 }
 0x3c8   :  { %v885_v41 = vadd.f32 %v884_v38, %v883_v20  ;;  %v889_v42 = vadd.f32 %v888_v39, %v881_v26  ;;  %v1351_v43 = vmul.f32 %v2181_v40, %v2181_v40  ;;  %1682 = vmatprep.subr.bf16.mxu1 %v1843_v7 }
 0x3ca   :  { %v886_v44 = vrot.slane %v885_v41, 1  ;;  %v890_v45 = vrot.slane %v889_v42, 2  ;;  %1354 = vadd.xlane.f32.xlu1 %v1351_v43 }
 0x3cb   :  { %1683 = vmatpush3.bf16.msra.mxu1 %v1771_v6 }
 0x3cc   :  { %v887_v46 = vadd.f32 %v886_v44, %v885_v41  ;;  %v891_v47 = vadd.f32 %v890_v45, %v889_v42  ;;  %1684 = vmatprep.subr.bf16.mxu1 %v1843_v7 }
 0x3ce   :  { %v894_v48 = vmul.f32 0.125, %v887_v46  ;;  %v892_v49 = vrot.slane %v891_v47, 1 }
 0x3cf   :  { %1685 = vmatpush3.bf16.msra.mxu1 %v1772_v8 }
 0x3d0   :  { %v896_v50 = vadd.f32 1e-05, %v894_v48  ;;  %v893_v51 = vadd.f32 %v892_v49, %v891_v47  ;;  %1686 = vmatprep.subr.bf16.mxu1 %v1843_v7 }
 0x3d2   :  { %1800 = vrsqrt.f32 %v896_v50  ;;  %v895_v52 = vmul.f32 0.125, %v893_v51 }
 0x3d3   :  { %1687 = vmatpush3.bf16.msra.mxu1 %v1773_v9 }
 0x3d4   :  { %v897_v53 = vadd.f32 1e-05, %v895_v52  ;;  %1688 = vmatprep.subr.bf16.mxu1 %v1843_v7 }
 0x3d6   :  { %1802 = vrsqrt.f32 %v897_v53 }
 0x3d7   :  { %1689 = vmatpush3.bf16.msra.mxu1 %v1774_v10 }
 0x3d8   :  { %1690 = vmatprep.subr.bf16.mxu1 %v1843_v7 }
 0x3db   :  { %1691 = vmatpush3.bf16.msra.mxu1 %v1775_v11 }
 0x3df   :  { %v1801_v54 = vpop.eup %1800 }
 0x3e0   :  { %v900_v56 = vmul.f32 %v1801_v54, %v878_v29 }
 0x3e2   :  { %v906_v57 = vmul.f32 %v1454_v55, %v900_v56 }
 0x3e3   :  { %v1803_v58 = vpop.eup %1802 }
 0x3e4   :  { %v901_v60 = vmul.f32 %v1803_v58, %v879_v35  ;;  %v912_v61 = vadd.f32 %v1455_v59, %v906_v57 }
 0x3e6   :  { %v907_v62 = vmul.f32 %v1454_v55, %v901_v60  ;;  %v914_v0 = vmax.f32 %v912_v61, 0.0  ;;  %v1776_v60 = vld [vmem:[%s2287_s9 + $0x38] sm:$0xff]   ;;  %v1777_v61 = vld [vmem:[%s2287_s9 + $0x30] sm:$0xff]  }
 0x3e8   :  { %v913_v63 = vadd.f32 %v1455_v59, %v907_v62  ;;  %v1778_v62 = vld [vmem:[%s2287_s9 + $0x28] sm:$0xff]  }
 0x3ea   :  { %v915_v1 = vmax.f32 %v913_v63, 0.0  ;;  %v1779_v63 = vld [vmem:[%s2287_s9 + $0x20] sm:$0xff]  }
 0x3ec   :  { %v917_v2 = vpack.c.bf16 %v915_v1, %v914_v0  ;;  %v1780_v0 = vld [vmem:[%s2287_s9 + $0x18] sm:$0xff]   ;;  %v1781_v1 = vld [vmem:[%s2287_s9 + $0x10] sm:$0xff]  }
 0x3ee   :  { %1673 = vmatmul.mubr.bf16.vlgmr.msra.gmra.mxu0 %v917_v2  ;;  %v1782_v2 = vld [vmem:[%s2287_s9 + $0x8] sm:$0xff]  }
 0x3ef   :  { %1712 = vmatprep.mubr.msk.bf16.mxu0 %vm1844_vm2, %v1843_v7  ;;  %1697 = vmatpush3.bf16.msra.mxu0 %v1776_v60 }
 0x3f0   :  { %1698 = vmatprep.subr.bf16.mxu0 %v1843_v7 }
 0x3f3   :  { %1699 = vmatpush3.bf16.msra.mxu0 %v1777_v61 }
 0x3f4   :  { %1700 = vmatprep.subr.bf16.mxu0 %v1843_v7 }
 0x3f7   :  { %1701 = vmatpush3.bf16.msra.mxu0 %v1778_v62 }
 0x3f8   :  { %1702 = vmatprep.subr.bf16.mxu0 %v1843_v7 }
 0x3fb   :  { %1703 = vmatpush3.bf16.msra.mxu0 %v1779_v63 }
 0x3fc   :  { %1704 = vmatprep.subr.bf16.mxu0 %v1843_v7 }
 0x3ff   :  { %1705 = vmatpush3.bf16.msra.mxu0 %v1780_v0 }
 0x400   :  { %1706 = vmatprep.subr.bf16.mxu0 %v1843_v7 }
 0x403   :  { %1707 = vmatpush3.bf16.msra.mxu0 %v1781_v1 }
 0x404   :  { %1708 = vmatprep.subr.bf16.mxu0 %v1843_v7 }
 0x407   :  { %1709 = vmatpush3.bf16.msra.mxu0 %v1782_v2 }
 0x408   :  { %1710 = vmatprep.subr.bf16.mxu0 %v1843_v7 }
 0x40b   :  { %1711 = vmatpush3.bf16.msra.mxu0 %v1783_v3 }
 0x44f   :  { %v1353_v2 = vpop.xlane.xlu1 %1352 }
 0x453   :  { %v1355_v3 = vpop.xlane.xlu1 %1354 }
 0x4ae   :  { %v1020_v13 = vpop.f32.mrf.mxu0 }
 0x4af   :  { %v1021_v14 = vadd.f32 %v1456_v12, %v1020_v13 }
 0x4b0   :  { %v1674_v15 = vpop.f32.mrf.mxu0 }
 0x4b1   :  { %v1027_v16 = vrot.slane %v1021_v14, 4 }
 0x4b2   :  { %v1023_v17 = vpop.f32.mrf.mxu0 }
 0x4b3   :  { %v1028_v18 = vadd.f32 %v1027_v16, %v1021_v14  ;;  %v1024_v19 = vadd.f32 %v1456_v12, %v1023_v17 }
 0x4b4   :  { %v1675_v21 = vpop.f32.mrf.mxu0 }
 0x4b5   :  { %v1029_v22 = vrot.slane %v1028_v18, 2  ;;  %v1033_v23 = vrot.slane %v1024_v19, 4 }
 0x4b7   :  { %v1030_v24 = vadd.f32 %v1029_v22, %v1028_v18  ;;  %v1034_v25 = vadd.f32 %v1033_v23, %v1024_v19 }
 0x4b9   :  { %v1031_v28 = vrot.slane %v1030_v24, 1  ;;  %v1035_v29 = vrot.slane %v1034_v25, 2 }
 0x4bb   :  { %v1032_v30 = vadd.f32 %v1031_v28, %v1030_v24  ;;  %v1036_v31 = vadd.f32 %v1035_v29, %v1034_v25 }
 0x4bd   :  { %v1039_v32 = vmul.f32 0.125, %v1032_v30  ;;  %v1037_v33 = vrot.slane %v1036_v31, 1 }
 0x4bf   :  { %v1041_v34 = vsub.f32 %v1021_v14, %v1039_v32  ;;  %v1038_v35 = vadd.f32 %v1037_v33, %v1036_v31 }
 0x4c1   :  { %v1043_v20 = vmul.f32 %v1041_v34, %v1041_v34  ;;  %v1040_v26 = vmul.f32 0.125, %v1038_v35 }
 0x4c3   :  { %v1045_v27 = vrot.slane %v1043_v20, 4  ;;  %v1042_v37 = vsub.f32 %v1024_v19, %v1040_v26 }
 0x4c5   :  { %v1046_v38 = vadd.f32 %v1045_v27, %v1043_v20  ;;  %v1044_v39 = vmul.f32 %v1042_v37, %v1042_v37 }
 0x4c7   :  { %v1047_v41 = vrot.slane %v1046_v38, 2  ;;  %v1051_v42 = vrot.slane %v1044_v39, 4 }
 0x4c9   :  { %v1048_v43 = vadd.f32 %v1047_v41, %v1046_v38  ;;  %v1052_v44 = vadd.f32 %v1051_v42, %v1044_v39 }
 0x4cb   :  { %v1049_v45 = vrot.slane %v1048_v43, 1  ;;  %v1053_v46 = vrot.slane %v1052_v44, 2 }
 0x4cd   :  { %v1050_v47 = vadd.f32 %v1049_v45, %v1048_v43  ;;  %v1054_v48 = vadd.f32 %v1053_v46, %v1052_v44  ;;  %v1473_v45 = vld [vmem:[%s2288_s10 + $0xc] ss:$0 sm:$0xff] }
 0x4cf   :  { %v1057_v49 = vmul.f32 0.125, %v1050_v47  ;;  %v1055_v50 = vrot.slane %v1054_v48, 1 }
 0x4d1   :  { %v1059_v51 = vadd.f32 1e-05, %v1057_v49  ;;  %v1056_v52 = vadd.f32 %v1055_v50, %v1054_v48  ;;  %v1474_v49 = vld [vmem:[%s2288_s10 + $0xd] ss:$0 sm:$0xff] }
 0x4d3   :  { %1804 = vrsqrt.f32 %v1059_v51  ;;  %v1058_v53 = vmul.f32 0.125, %v1056_v52 }
 0x4d5   :  { %v1060_v54 = vadd.f32 1e-05, %v1058_v53 }
 0x4d7   :  { %1806 = vrsqrt.f32 %v1060_v54 }
 0x4e0   :  { %v1805_v55 = vpop.eup %1804 }
 0x4e1   :  { %v1063_v56 = vmul.f32 %v1805_v55, %v1041_v34 }
 0x4e3   :  { %1065 = vst [vmem:[%s2290_s12] sm:$0xff] %v1063_v56 }
 0x4e4   :  { %v1807_v57 = vpop.eup %1806 }
 0x4e5   :  { %v1064_v58 = vmul.f32 %v1807_v57, %v1042_v37  ;;  %v1475_v57 = vld [vmem:[%s2288_s10 + $0xe] ss:$0 sm:$0xff]  ;;  %s1845_s10 = smov [#allocation2]  }
 0x4e6   :  { %s1386_s5 = sshll.u32 %s1845_s10, 4  ;;  %s1387_s5 = int_to_ptr.vmem [resolvable:$true] %s1386_s5 }
 0x4e7   :  { %1066 = vst [vmem:[%s2290_s12 + $0x8] sm:$0xff] %v1064_v58  ;;  %v1067_v59 = vpack.c.bf16 %v1064_v58, %v1063_v56  ;;  %s1820_s3 = scalar_lea.vmem %s1387_s5, 16  ;;  %s1824_s14 = scalar_lea.vmem %s1387_s5, 32 }
 0x4e8   :  { %p1821_p0 = scmp.ne.s32.totalorder %s1387_s5, %s1820_s3  ;;  %p1825_p1 = scmp.lt.s32.totalorder %s1387_s5, %s1387_s5 }
 0x4e9   :  { %1693 = vmatmul.mubr.bf16.vlgmr.msra.gmra.mxu1 %v1067_v59  ;;  %p1826_p2 = scmp.lt.s32.totalorder %s1824_s14, %s1820_s3 }
 0x4eb   :  { %p1827_p3 = por %p1826_p2, %p1825_p1 }
 0x4ed   :  { %p1828_p4 = pnand %p1827_p3, %p1821_p0 }
 0x5a9   :  { %v1166_v4 = vpop.f32.mrf.mxu1 }
 0x5aa   :  { %v1175_v5 = vrot.slane %v1166_v4, 4 }
 0x5ab   :  { %v1694_v6 = vpop.f32.mrf.mxu1 }
 0x5ac   :  { %v1176_v8 = vadd.f32 %v1175_v5, %v1166_v4  ;;  %v1356_v6 = vmax.f32 %v1353_v2, 1e-24 }
 0x5ad   :  { %v1169_v9 = vpop.f32.mrf.mxu1 }
 0x5ae   :  { %v1177_v10 = vrot.slane %v1176_v8, 2  ;;  %v1181_v11 = vrot.slane %v1169_v9, 4 }
 0x5af   :  { %v1695_v12 = vpop.f32.mrf.mxu1 }
 0x5b0   :  { %v1178_v13 = vadd.f32 %v1177_v10, %v1176_v8  ;;  %v1182_v14 = vadd.f32 %v1181_v11, %v1169_v9 }
 0x5b2   :  { %v1179_v15 = vrot.slane %v1178_v13, 1  ;;  %v1183_v16 = vrot.slane %v1182_v14, 2 }
 0x5b4   :  { %v1180_v17 = vadd.f32 %v1179_v15, %v1178_v13  ;;  %v1184_v18 = vadd.f32 %v1183_v16, %v1182_v14 }
 0x5b6   :  { %v1187_v7 = vmul.f32 0.125, %v1180_v17  ;;  %v1185_v19 = vrot.slane %v1184_v18, 1 }
 0x5b8   :  { %v1189_v21 = vsub.f32 %v1166_v4, %v1187_v7  ;;  %v1186_v22 = vadd.f32 %v1185_v19, %v1184_v18  ;;  %v1357_v4 = vmax.f32 %v1355_v3, 1e-24 }
 0x5ba   :  { %v1191_v23 = vmul.f32 %v1189_v21, %v1189_v21  ;;  %v1188_v24 = vmul.f32 0.125, %v1186_v22 }
 0x5bc   :  { %v1193_v25 = vrot.slane %v1191_v23, 4  ;;  %v1190_v28 = vsub.f32 %v1169_v9, %v1188_v24 }
 0x5be   :  { %v1194_v29 = vadd.f32 %v1193_v25, %v1191_v23  ;;  %v1192_v30 = vmul.f32 %v1190_v28, %v1190_v28 }
 0x5c0   :  { %v1195_v31 = vrot.slane %v1194_v29, 2  ;;  %v1199_v32 = vrot.slane %v1192_v30, 4 }
 0x5c2   :  { %v1196_v33 = vadd.f32 %v1195_v31, %v1194_v29  ;;  %v1200_v34 = vadd.f32 %v1199_v32, %v1192_v30 }
 0x5c4   :  { %v1197_v35 = vrot.slane %v1196_v33, 1  ;;  %v1201_v20 = vrot.slane %v1200_v34, 2 }
 0x5c6   :  { %v1198_v26 = vadd.f32 %v1197_v35, %v1196_v33  ;;  %v1202_v27 = vadd.f32 %v1201_v20, %v1200_v34 }
 0x5c8   :  { %v1205_v37 = vmul.f32 0.125, %v1198_v26  ;;  %v1203_v38 = vrot.slane %v1202_v27, 1 }
 0x5ca   :  { %v1207_v39 = vadd.f32 1e-05, %v1205_v37  ;;  %v1204_v41 = vadd.f32 %v1203_v38, %v1202_v27 }
 0x5cc   :  { %1808 = vrsqrt.f32 %v1207_v39  ;;  %v1206_v42 = vmul.f32 0.125, %v1204_v41 }
 0x5ce   :  { %v1208_v43 = vadd.f32 1e-05, %v1206_v42 }
 0x5d0   :  { %1810 = vrsqrt.f32 %v1208_v43 }
 0x5d1   :  { %1812 = vrsqrt.f32 %v1357_v4 }
 0x5d9   :  { %v1809_v44 = vpop.eup %1808 }
 0x5da   :  { %v1211_v46 = vmul.f32 %v1809_v44, %v1189_v21 }
 0x5dc   :  { %v1217_v47 = vmul.f32 %v1473_v45, %v1211_v46 }
 0x5dd   :  { %v1811_v48 = vpop.eup %1810 }
 0x5de   :  { %v1212_v50 = vmul.f32 %v1811_v48, %v1190_v28  ;;  %v1223_v51 = vadd.f32 %v1474_v49, %v1217_v47  ;;  %v1813_v11 = vpop.eup %1812 }
 0x5df   :  { %v1361_v14 = vmul.f32 %v1813_v11, %v2181_v40 }
 0x5e0   :  { %v1218_v52 = vmul.f32 %v1473_v45, %v1212_v50  ;;  %v1225_v54 = vmax.f32 %v1223_v51, 0.0 }
 0x5e2   :  { %v1224_v53 = vadd.f32 %v1474_v49, %v1218_v52 }
 0x5e4   :  { %v1226_v55 = vmax.f32 %v1224_v53, 0.0 }
 0x5e6   :  { %v1228_v56 = vpack.c.bf16 %v1226_v55, %v1225_v54 }
 0x5e8   :  { %1713 = vmatmul.mubr.bf16.vlgmr.msra.gmra.mxu0 %v1228_v56 }
 0x6a8   :  { %v1331_v58 = vpop.f32.mrf.mxu0 }
 0x6a9   :  { %v1332_v59 = vadd.f32 %v1475_v57, %v1331_v58 }
 0x6aa   :  { %v1714_v60 = vpop.f32.mrf.mxu0 }
 0x6ab   :  { %v1338_v61 = vmul.f32 %v1332_v59, %v1332_v59 }
 0x6ac   :  { %v1334_v62 = vpop.f32.mrf.mxu0 }
 0x6ad   :  { %v1335_v63 = vadd.f32 %v1475_v57, %v1334_v62  ;;  %1340 = vadd.xlane.f32.xlu0 %v1338_v61 }
 0x6ae   :  { %v1715_v0 = vpop.f32.mrf.mxu0 }
 0x6af   :  { %v1339_v1 = vmul.f32 %v1335_v63, %v1335_v63 }
 0x6b1   :  { %1342 = vadd.xlane.f32.xlu0 %v1339_v1 }
 0x736   :  { %v1341_v5 = vpop.xlane.xlu0 %1340 }
 0x737   :  { %v1344_v8 = vmax.f32 %v1341_v5, 1e-24 }
 0x739   :  { %1814 = vrsqrt.f32 %v1344_v8 }
 0x73a   :  { %v1343_v9 = vpop.xlane.xlu0 %1342  ;;  %1816 = vrsqrt.f32 %v1356_v6 }
 0x73b   :  { %v1345_v10 = vmax.f32 %v1343_v9, 1e-24 }
 0x73d   :  { %1818 = vrsqrt.f32 %v1345_v10 }
 0x746   :  { %v1815_v12 = vpop.eup %1814 }
 0x747   :  { %v1348_v13 = vmul.f32 %v1815_v12, %v1332_v59  ;;  %v1817_v15 = vpop.eup %1816 }
 0x748   :  { %v1360_v7 = vmul.f32 %v1817_v15, %v2177_v36 }
 0x749   :  { %v1362_v16 = vmul.f32 %v1361_v14, %v1348_v13 }
 0x74a   :  { %v1819_v17 = vpop.eup %1818 }
 0x74b   :  { %1363 = vadd.xlane.f32.xlu0 %v1362_v16  ;;  %v1349_v18 = vmul.f32 %v1819_v17, %v1335_v63 }
 0x74d   :  { %v1365_v19 = vmul.f32 %v1360_v7, %v1349_v18 }
 0x74f   :  { %1366 = vadd.xlane.f32.xlu1 %v1365_v19 }
 0x7d4   :  { %v1364_v21 = vpop.xlane.xlu0 %1363 }
 0x7d8   :  { %v1367_v22 = vpop.xlane.xlu1 %1366 }
 0x7d9   :  { %v1368_v23 = vadd.f32 %v1367_v22, %v1364_v21 }
 0x7db   :  { %v1369_v24 = vmul.f32 2.0, %v1368_v23 }
 0x7dd   :  { %v1370_v25 = vsub.f32 4.0, %v1369_v24 }
 0x7df   :  { %v1371_v28 = vrot.slane %v1370_v25, 4 }
 0x7e1   :  { %v1372_v29 = vadd.f32 %v1371_v28, %v1370_v25 }
 0x7e3   :  { %v1373_v30 = vrot.slane %v1372_v29, 2 }
 0x7e5   :  { %v1374_v31 = vadd.f32 %v1373_v30, %v1372_v29 }
 0x7e7   :  { %v1375_v32 = vrot.slane %v1374_v31, 1 }
 0x7e9   :  { %v1376_v40 = vadd.f32 %v1375_v32, %v1374_v31 }
 0x7eb   :  { %v1377_v33 = vmul.f32 0.125, %v1376_v40 }
 0x7ed   :  { %1379 = vst.msk [vmem:[#allocation2] sm:$0x1] %vm1378_vm3, %v1377_v33 }
 0x7ee   :  { %1831 = shalt.err (!%p1828_p4)
}
 0x7ef   :  { %1389 = dma.vmem_to_hbm [thread:$0]  %s1387_s5, 16, %s2289_s11, [#allocation3]  }
 0x7f0   :  { %1840 = dma.done.wait [#allocation3], 16  }
 0x7f1   :  { %1841 = vsyncadd [#allocation3], 4294967280 }
 0x7f2   :  { %1401 = vsyncpa [#allocation3], 1 }

</bundles_post_ra>
